<compile_context>
chip_gen: v7x
topology: tpu7x:2x2x1
jax: 0.10.0
libtpu: 0.0.40
codegen_flags: <defaults>
</compile_context>

<pallas_src>
import jax
import jax.numpy as jnp
from jax.experimental import pallas as pl
from jax.experimental.pallas import tpu as pltpu


# ------------------------------ Pallas kernel ------------------------------ #

def _bottleneck_kernel(x_ref, w1_ref, b1_ref, w2_ref, b2_ref, w3_ref, b3_ref,
                       o_ref, h1p_ref, xcol_ref):
    # Block shapes:
    #   x_ref  : (H+2, W, Cin)      bf16  full image, H zero-padded by 1 row
    #                                      top/bottom; resident across bands.
    #   w1_ref : (Cin, width)       bf16  (BN1 scale folded in)
    #   w2_ref : (9*width, width)   bf16  (BN2 scale folded in; tap-major rows)
    #   w3_ref : (width, Cout)      bf16  (BN3 scale folded in)
    #   b*_ref : (1, C)             f32
    #   o_ref  : (B, W, Cout)       bf16  one output row band
    #   h1p_ref: (B+2, W+2, width)  bf16  scratch: conv1 out with 1-px halo
    #   xcol_ref:(B*W, 9*width)     bf16  scratch: im2col of h1p
    Hp2, W, cin = x_ref.shape
    H = Hp2 - 2
    B = o_ref.shape[0]
    width = w1_ref.shape[1]
    cout = w3_ref.shape[1]

    h = pl.program_id(1)
    row0 = pl.multiple_of(h * B, B)      # first padded-x row of the halo'd band

    # --- conv1 (1x1) + bn1 + relu on the B+2 halo'd rows of this band -------
    xb = x_ref[pl.ds(row0, B + 2), :, :].reshape((B + 2) * W, cin)
    h1 = jnp.dot(xb, w1_ref[...], preferred_element_type=jnp.float32)
    h1 = jnp.maximum(h1 + b1_ref[...], 0.0).reshape(B + 2, W, width)

    # Halo rows that fall outside the image must contribute ZERO to conv2's
    # padding (padded-x rows 0 and H+1 are zeros, but conv1(0)=relu(b1) != 0).
    pad_row = jax.lax.broadcasted_iota(jnp.int32, (B + 2, 1, 1), 0) + row0
    valid = jnp.logical_and(pad_row >= 1, pad_row <= H)
    h1 = jnp.where(valid, h1, 0.0)

    # Stage into the padded scratch; zero only the left/right halo columns
    # (every step -- cheap, and correct under megacore grid sharding).
    h1p_ref[:, 1:W + 1, :] = h1.astype(jnp.bfloat16)
    zcol = jnp.zeros((B + 2, 1, width), jnp.bfloat16)
    h1p_ref[:, 0:1, :] = zcol
    h1p_ref[:, W + 1:W + 2, :] = zcol

    # --- conv2 (3x3, pad=1, stride=1) + bn2 + relu as ONE im2col matmul -----
    # Write the 9 shifted slabs once, then a single MXU matmul with K=9*width.
    for dy in range(3):
        for dx in range(3):
            t = dy * 3 + dx
            xcol_ref[:, t * width:(t + 1) * width] = (
                h1p_ref[dy:dy + B, dx:dx + W, :].reshape(B * W, width))
    h2 = jnp.dot(xcol_ref[...], w2_ref[...], preferred_element_type=jnp.float32)
    h2 = jnp.maximum(h2 + b2_ref[...], 0.0).astype(jnp.bfloat16)

    # --- conv3 (1x1) + bn3 + identity + relu ---------------------------------
    out = jnp.dot(h2, w3_ref[...], preferred_element_type=jnp.float32)
    ident = x_ref[pl.ds(row0 + 1, B), :, :].reshape(B * W, cout).astype(jnp.float32)
    out = jnp.maximum(out + b3_ref[...] + ident, 0.0)
    o_ref[...] = out.reshape(B, W, cout).astype(o_ref.dtype)


# ------------------------------- JAX wrapper -------------------------------- #

def bottleneck_forward(x_nchw, params, stride=1, band_rows=None):
    """Equivalent of Bottleneck.forward with downsample=None (so stride must be
    1 and inplanes == planes * expansion for the residual add).  Returns bf16
    NCHW."""
    assert stride == 1, "downsample=None requires stride=1"
    N, Cin, H, W = x_nchw.shape
    width = params["w1"].shape[1]
    Cout = params["w3"].shape[1]
    assert Cout == Cin, "downsample=None requires inplanes == planes*expansion"

    if band_rows is None:
        band_rows = 8 if H % 8 == 0 else H
    assert H % band_rows == 0, "band_rows must divide H"
    B = band_rows
    nbands = H // B

    # NCHW -> NHWC once at entry (and back once at exit); zero-pad H by 1 row
    # on each side (conv2 halo); bf16 at the kernel boundary to halve HBM I/O.
    x = jnp.transpose(x_nchw, (0, 2, 3, 1)).astype(jnp.bfloat16)
    x = jnp.pad(x, ((0, 0), (1, 1), (0, 0), (0, 0)))

    out = pl.pallas_call(
        _bottleneck_kernel,
        out_shape=jax.ShapeDtypeStruct((N, H, W, Cout), jnp.bfloat16),
        grid_spec=pltpu.PrefetchScalarGridSpec(
            num_scalar_prefetch=0,
            grid=(N, nbands),
            in_specs=[
                # full padded image, resident across the band axis
                pl.BlockSpec((None, H + 2, W, Cin), lambda n, h: (n, 0, 0, 0)),
                pl.BlockSpec((Cin, width), lambda n, h: (0, 0)),        # w1*s1
                pl.BlockSpec((1, width), lambda n, h: (0, 0)),          # b1
                pl.BlockSpec((9 * width, width), lambda n, h: (0, 0)),  # w2*s2
                pl.BlockSpec((1, width), lambda n, h: (0, 0)),          # b2
                pl.BlockSpec((width, Cout), lambda n, h: (0, 0)),       # w3*s3
                pl.BlockSpec((1, Cout), lambda n, h: (0, 0)),           # b3
            ],
            out_specs=pl.BlockSpec((None, B, W, Cout), lambda n, h: (n, h, 0, 0)),
            scratch_shapes=[
                pltpu.VMEM((B + 2, W + 2, width), jnp.bfloat16),   # padded conv1
                pltpu.VMEM((B * W, 9 * width), jnp.bfloat16),      # im2col
            ],
        ),
        compiler_params=pltpu.CompilerParams(
            dimension_semantics=("parallel", "parallel"),
            vmem_limit_bytes=32 * 1024 * 1024),
    )(x, params["w1"], params["b1"], params["w2"], params["b2"],
      params["w3"], params["b3"])

    return jnp.transpose(out, (0, 3, 1, 2))             # NHWC -> NCHW (bf16)


def make_params(w1_oihw, w2_oihw, w3_oihw, s1, b1, s2, b2, s3, b3):
    """Fold eval-mode BN scale into the conv weights and cast them to bf16."""
    width, inplanes = w1_oihw.shape[0], w1_oihw.shape[1]
    out_ch = w3_oihw.shape[0]
    w1 = (w1_oihw.reshape(width, inplanes).T * s1[None, :]).astype(jnp.bfloat16)
    # (O, I, 3, 3) -> (3, 3, I, O) -> (9*I, O); row index = (dy*3+dx)*I + c_in
    # matches the tap-major im2col column layout built in the kernel.
    w2 = (jnp.transpose(w2_oihw, (2, 3, 1, 0)).reshape(9 * width, width)
          * s2[None, :]).astype(jnp.bfloat16)
    w3 = (w3_oihw.reshape(out_ch, width).T * s3[None, :]).astype(jnp.bfloat16)
    return {
        "w1": w1, "b1": b1.reshape(1, width).astype(jnp.float32),
        "w2": w2, "b2": b2.reshape(1, width).astype(jnp.float32),
        "w3": w3, "b3": b3.reshape(1, out_ch).astype(jnp.float32),
    }


# ----------------------------- reference model ----------------------------- #

def ref_forward(x, w1_oihw, w2_oihw, w3_oihw, s1, b1, s2, b2, s3, b3):
    def conv(x, w, stride, pad):
        return jax.lax.conv_general_dilated(
            x, w, (stride, stride), [(pad, pad), (pad, pad)],
            dimension_numbers=("NCHW", "OIHW", "NCHW"))

    def bn(y, s, b):
        return y * s[None, :, None, None] + b[None, :, None, None]

    out = jax.nn.relu(bn(conv(x, w1_oihw, 1, 0), s1, b1))
    out = jax.nn.relu(bn(conv(out, w2_oihw, 1, 1), s2, b2))
    out = bn(conv(out, w3_oihw, 1, 0), s3, b3) + x
    return jax.nn.relu(out)


# --------------------------------- main ------------------------------------ #

if __name__ == "__main__":
    # Bottleneck-consistent small shapes: inplanes = 4*planes so the identity
    # add works with downsample=None (the default in the PyTorch module).
    N, planes, H, W = 2, 8, 16, 16
    inplanes = planes * 4            # 32
    width = planes                   # base_width=64, groups=1 -> width = planes
    out_ch = planes * 4              # 32 (expansion = 4)
    eps = 1e-5                       # nn.BatchNorm2d default

    key = jax.random.PRNGKey(0)
    keys = jax.random.split(key, 16)

    x = jax.random.normal(keys[0], (N, inplanes, H, W), dtype=jnp.float32)

    # Conv weights in PyTorch OIHW layout (deterministic init).
    w1_oihw = 0.1 * jax.random.normal(keys[1], (width, inplanes, 1, 1), jnp.float32)
    w2_oihw = 0.1 * jax.random.normal(keys[2], (width, width, 3, 3), jnp.float32)
    w3_oihw = 0.1 * jax.random.normal(keys[3], (out_ch, width, 1, 1), jnp.float32)

    def bn_stats(kg, kb, km, kv, c):
        gamma = 1.0 + 0.1 * jax.random.normal(kg, (c,), jnp.float32)
        beta = 0.1 * jax.random.normal(kb, (c,), jnp.float32)
        mean = 0.1 * jax.random.normal(km, (c,), jnp.float32)
        var = jax.random.uniform(kv, (c,), jnp.float32, 0.5, 1.5)
        scale = gamma * jax.lax.rsqrt(var + eps)
        bias = beta - mean * scale
        return scale, bias

    s1, b1 = bn_stats(keys[4], keys[5], keys[6], keys[7], width)
    s2, b2 = bn_stats(keys[8], keys[9], keys[10], keys[11], width)
    s3, b3 = bn_stats(keys[12], keys[13], keys[14], keys[15], out_ch)

    params = make_params(w1_oihw, w2_oihw, w3_oihw, s1, b1, s2, b2, s3, b3)

    out = jax.block_until_ready(bottleneck_forward(x, params, stride=1))
    ref = jax.block_until_ready(
        ref_forward(x, w1_oihw, w2_oihw, w3_oihw, s1, b1, s2, b2, s3, b3))

    assert out.shape == (N, out_ch, H, W), out.shape
    out_f32 = out.astype(jnp.float32)
    max_err = float(jnp.max(jnp.abs(out_f32 - ref)))
    # bf16 activations at the HBM boundary + bf16 weights (f32 accumulation)
    # -> loosened tolerance vs the pure-f32 reference.
    assert jnp.allclose(out_f32, ref, rtol=5e-2, atol=5e-2), max_err

    print("KERNEL_OK")
</pallas_src>

<mosaic_0001>
module attributes {stable_mosaic.version = 11 : i64} {
  func.func @_bottleneck_kernel(%arg0: i32, %arg1: i32, %arg2: memref<1x18x16x32xbf16, #tpu.memory_space<vmem>>, %arg3: memref<32x8xbf16, #tpu.memory_space<vmem>>, %arg4: memref<1x8xf32, #tpu.memory_space<vmem>>, %arg5: memref<72x8xbf16, #tpu.memory_space<vmem>>, %arg6: memref<1x8xf32, #tpu.memory_space<vmem>>, %arg7: memref<8x32xbf16, #tpu.memory_space<vmem>>, %arg8: memref<1x32xf32, #tpu.memory_space<vmem>>, %arg9: memref<1x8x16x32xbf16, #tpu.memory_space<vmem>>, %arg10: memref<10x18x8xbf16, #tpu.memory_space<vmem>>, %arg11: memref<128x72xbf16, #tpu.memory_space<vmem>>) attributes {dimension_semantics = [#tpu.dimension_semantics<parallel>, #tpu.dimension_semantics<parallel>], iteration_bounds = array<i64: 2, 2>, scalar_prefetch = 0 : i64, scratch_operands = 2 : i64, tpu.core_type = #tpu.core_type<tc>, window_params = [{transform_indices = @transform_0, window_bounds = array<i64: 1, 18, 16, 32>}, {pipeline_mode = #tpu.pipeline_mode<synchronous>, transform_indices = @transform_1, window_bounds = array<i64: 32, 8>}, {pipeline_mode = #tpu.pipeline_mode<synchronous>, transform_indices = @transform_2, window_bounds = array<i64: 1, 8>}, {pipeline_mode = #tpu.pipeline_mode<synchronous>, transform_indices = @transform_3, window_bounds = array<i64: 72, 8>}, {pipeline_mode = #tpu.pipeline_mode<synchronous>, transform_indices = @transform_4, window_bounds = array<i64: 1, 8>}, {pipeline_mode = #tpu.pipeline_mode<synchronous>, transform_indices = @transform_5, window_bounds = array<i64: 8, 32>}, {pipeline_mode = #tpu.pipeline_mode<synchronous>, transform_indices = @transform_6, window_bounds = array<i64: 1, 32>}, {transform_indices = @transform_7, window_bounds = array<i64: 1, 8, 16, 32>}]} {
    %c8_i32 = arith.constant 8 : i32
    %0 = arith.muli %arg1, %c8_i32 : i32
    %1 = tpu.assume_multiple %0, 8 : i32
    %c0 = arith.constant 0 : index
    %2 = arith.index_cast %1 : i32 to index
    %c0_0 = arith.constant 0 : index
    %c0_1 = arith.constant 0 : index
    %3 = vector.load %arg2[%c0, %2, %c0_0, %c0_1] : memref<1x18x16x32xbf16, #tpu.memory_space<vmem>>, vector<1x10x16x32xbf16>
    %4 = vector.shape_cast %3 : vector<1x10x16x32xbf16> to vector<10x16x32xbf16>
    %5 = vector.shape_cast %4 : vector<10x16x32xbf16> to vector<160x32xbf16>
    %c0_2 = arith.constant 0 : index
    %c0_3 = arith.constant 0 : index
    %6 = vector.load %arg3[%c0_2, %c0_3] : memref<32x8xbf16, #tpu.memory_space<vmem>>, vector<32x8xbf16>
    %cst = arith.constant dense<0.000000e+00> : vector<160x8xf32>
    %7 = tpu.matmul %5, %6, %cst {dimension_numbers = #tpu.dot_dimension_numbers<[1], [0], [0], [1], [0, 0, 1, 1], [], []>} : vector<160x32xbf16>, vector<32x8xbf16>, vector<160x8xf32> -> vector<160x8xf32>
    %c0_4 = arith.constant 0 : index
    %c0_5 = arith.constant 0 : index
    %8 = vector.load %arg4[%c0_4, %c0_5] : memref<1x8xf32, #tpu.memory_space<vmem>>, vector<1x8xf32>
    %9 = vector.broadcast %8 : vector<1x8xf32> to vector<160x8xf32>
    %10 = arith.addf %7, %9 : vector<160x8xf32>
    %cst_6 = arith.constant 0.000000e+00 : f32
    %11 = vector.broadcast %cst_6 : f32 to vector<160x8xf32>
    %12 = arith.maximumf %10, %11 : vector<160x8xf32>
    %13 = vector.shape_cast %12 : vector<160x8xf32> to vector<10x16x8xf32>
    %14 = tpu.iota {dimensions = array<i32: 0>} : vector<10x1x1xi32>
    %15 = vector.broadcast %1 : i32 to vector<10x1x1xi32>
    %16 = arith.addi %14, %15 : vector<10x1x1xi32>
    %c1_i32 = arith.constant 1 : i32
    %17 = vector.broadcast %c1_i32 : i32 to vector<10x1x1xi32>
    %18 = arith.cmpi sge, %16, %17 : vector<10x1x1xi32>
    %c16_i32 = arith.constant 16 : i32
    %19 = vector.broadcast %c16_i32 : i32 to vector<10x1x1xi32>
    %20 = arith.cmpi sle, %16, %19 : vector<10x1x1xi32>
    %21 = arith.andi %18, %20 : vector<10x1x1xi1>
    %cst_7 = arith.constant 0.000000e+00 : f32
    %22 = vector.shape_cast %21 : vector<10x1x1xi1> to vector<10x1x1xi1>
    %23 = vector.broadcast %22 : vector<10x1x1xi1> to vector<10x16x8xi1>
    %24 = vector.broadcast %cst_7 : f32 to vector<10x16x8xf32>
    %25 = arith.select %23, %13, %24 : vector<10x16x8xi1>, vector<10x16x8xf32>
    %26 = arith.truncf %25 : vector<10x16x8xf32> to vector<10x16x8xbf16>
    %c0_8 = arith.constant 0 : index
    %c1 = arith.constant 1 : index
    %c0_9 = arith.constant 0 : index
    %27 = vector.load %arg10[%c0_8, %c1, %c0_9] : memref<10x18x8xbf16, #tpu.memory_space<vmem>>, vector<10x16x8xbf16>
    tpu.vector_store %arg10[%c0_8, %c1, %c0_9], %26 {strides = array<i32>} : memref<10x18x8xbf16, #tpu.memory_space<vmem>>, vector<10x16x8xbf16>,
    %cst_10 = arith.constant 0.000000e+00 : bf16
    %28 = vector.broadcast %cst_10 : bf16 to vector<10x1x8xbf16>
    %c0_11 = arith.constant 0 : index
    %c0_12 = arith.constant 0 : index
    %c0_13 = arith.constant 0 : index
    %29 = vector.load %arg10[%c0_11, %c0_12, %c0_13] : memref<10x18x8xbf16, #tpu.memory_space<vmem>>, vector<10x1x8xbf16>
    tpu.vector_store %arg10[%c0_11, %c0_12, %c0_13], %28 {strides = array<i32>} : memref<10x18x8xbf16, #tpu.memory_space<vmem>>, vector<10x1x8xbf16>,
    %c0_14 = arith.constant 0 : index
    %c17 = arith.constant 17 : index
    %c0_15 = arith.constant 0 : index
    %30 = vector.load %arg10[%c0_14, %c17, %c0_15] : memref<10x18x8xbf16, #tpu.memory_space<vmem>>, vector<10x1x8xbf16>
    tpu.vector_store %arg10[%c0_14, %c17, %c0_15], %28 {strides = array<i32>} : memref<10x18x8xbf16, #tpu.memory_space<vmem>>, vector<10x1x8xbf16>,
    %c0_16 = arith.constant 0 : index
    %c0_17 = arith.constant 0 : index
    %c0_18 = arith.constant 0 : index
    %31 = vector.load %arg10[%c0_16, %c0_17, %c0_18] : memref<10x18x8xbf16, #tpu.memory_space<vmem>>, vector<8x16x8xbf16>
    %32 = vector.shape_cast %31 : vector<8x16x8xbf16> to vector<128x8xbf16>
    %c0_19 = arith.constant 0 : index
    %c0_20 = arith.constant 0 : index
    %33 = vector.load %arg11[%c0_19, %c0_20] : memref<128x72xbf16, #tpu.memory_space<vmem>>, vector<128x8xbf16>
    tpu.vector_store %arg11[%c0_19, %c0_20], %32 {strides = array<i32>} : memref<128x72xbf16, #tpu.memory_space<vmem>>, vector<128x8xbf16>,
    %c0_21 = arith.constant 0 : index
    %c1_22 = arith.constant 1 : index
    %c0_23 = arith.constant 0 : index
    %34 = vector.load %arg10[%c0_21, %c1_22, %c0_23] : memref<10x18x8xbf16, #tpu.memory_space<vmem>>, vector<8x16x8xbf16>
    %35 = vector.shape_cast %34 : vector<8x16x8xbf16> to vector<128x8xbf16>
    %c0_24 = arith.constant 0 : index
    %c8 = arith.constant 8 : index
    %36 = vector.load %arg11[%c0_24, %c8] : memref<128x72xbf16, #tpu.memory_space<vmem>>, vector<128x8xbf16>
    tpu.vector_store %arg11[%c0_24, %c8], %35 {strides = array<i32>} : memref<128x72xbf16, #tpu.memory_space<vmem>>, vector<128x8xbf16>,
    %c0_25 = arith.constant 0 : index
    %c2 = arith.constant 2 : index
    %c0_26 = arith.constant 0 : index
    %37 = vector.load %arg10[%c0_25, %c2, %c0_26] : memref<10x18x8xbf16, #tpu.memory_space<vmem>>, vector<8x16x8xbf16>
    %38 = vector.shape_cast %37 : vector<8x16x8xbf16> to vector<128x8xbf16>
    %c0_27 = arith.constant 0 : index
    %c16 = arith.constant 16 : index
    %39 = vector.load %arg11[%c0_27, %c16] : memref<128x72xbf16, #tpu.memory_space<vmem>>, vector<128x8xbf16>
    tpu.vector_store %arg11[%c0_27, %c16], %38 {strides = array<i32>} : memref<128x72xbf16, #tpu.memory_space<vmem>>, vector<128x8xbf16>,
    %c1_28 = arith.constant 1 : index
    %c0_29 = arith.constant 0 : index
    %c0_30 = arith.constant 0 : index
    %40 = vector.load %arg10[%c1_28, %c0_29, %c0_30] : memref<10x18x8xbf16, #tpu.memory_space<vmem>>, vector<8x16x8xbf16>
    %41 = vector.shape_cast %40 : vector<8x16x8xbf16> to vector<128x8xbf16>
    %c0_31 = arith.constant 0 : index
    %c24 = arith.constant 24 : index
    %42 = vector.load %arg11[%c0_31, %c24] : memref<128x72xbf16, #tpu.memory_space<vmem>>, vector<128x8xbf16>
    tpu.vector_store %arg11[%c0_31, %c24], %41 {strides = array<i32>} : memref<128x72xbf16, #tpu.memory_space<vmem>>, vector<128x8xbf16>,
    %c1_32 = arith.constant 1 : index
    %c1_33 = arith.constant 1 : index
    %c0_34 = arith.constant 0 : index
    %43 = vector.load %arg10[%c1_32, %c1_33, %c0_34] : memref<10x18x8xbf16, #tpu.memory_space<vmem>>, vector<8x16x8xbf16>
    %44 = vector.shape_cast %43 : vector<8x16x8xbf16> to vector<128x8xbf16>
    %c0_35 = arith.constant 0 : index
    %c32 = arith.constant 32 : index
    %45 = vector.load %arg11[%c0_35, %c32] : memref<128x72xbf16, #tpu.memory_space<vmem>>, vector<128x8xbf16>
    tpu.vector_store %arg11[%c0_35, %c32], %44 {strides = array<i32>} : memref<128x72xbf16, #tpu.memory_space<vmem>>, vector<128x8xbf16>,
    %c1_36 = arith.constant 1 : index
    %c2_37 = arith.constant 2 : index
    %c0_38 = arith.constant 0 : index
    %46 = vector.load %arg10[%c1_36, %c2_37, %c0_38] : memref<10x18x8xbf16, #tpu.memory_space<vmem>>, vector<8x16x8xbf16>
    %47 = vector.shape_cast %46 : vector<8x16x8xbf16> to vector<128x8xbf16>
    %c0_39 = arith.constant 0 : index
    %c40 = arith.constant 40 : index
    %48 = vector.load %arg11[%c0_39, %c40] : memref<128x72xbf16, #tpu.memory_space<vmem>>, vector<128x8xbf16>
    tpu.vector_store %arg11[%c0_39, %c40], %47 {strides = array<i32>} : memref<128x72xbf16, #tpu.memory_space<vmem>>, vector<128x8xbf16>,
    %c2_40 = arith.constant 2 : index
    %c0_41 = arith.constant 0 : index
    %c0_42 = arith.constant 0 : index
    %49 = vector.load %arg10[%c2_40, %c0_41, %c0_42] : memref<10x18x8xbf16, #tpu.memory_space<vmem>>, vector<8x16x8xbf16>
    %50 = vector.shape_cast %49 : vector<8x16x8xbf16> to vector<128x8xbf16>
    %c0_43 = arith.constant 0 : index
    %c48 = arith.constant 48 : index
    %51 = vector.load %arg11[%c0_43, %c48] : memref<128x72xbf16, #tpu.memory_space<vmem>>, vector<128x8xbf16>
    tpu.vector_store %arg11[%c0_43, %c48], %50 {strides = array<i32>} : memref<128x72xbf16, #tpu.memory_space<vmem>>, vector<128x8xbf16>,
    %c2_44 = arith.constant 2 : index
    %c1_45 = arith.constant 1 : index
    %c0_46 = arith.constant 0 : index
    %52 = vector.load %arg10[%c2_44, %c1_45, %c0_46] : memref<10x18x8xbf16, #tpu.memory_space<vmem>>, vector<8x16x8xbf16>
    %53 = vector.shape_cast %52 : vector<8x16x8xbf16> to vector<128x8xbf16>
    %c0_47 = arith.constant 0 : index
    %c56 = arith.constant 56 : index
    %54 = vector.load %arg11[%c0_47, %c56] : memref<128x72xbf16, #tpu.memory_space<vmem>>, vector<128x8xbf16>
    tpu.vector_store %arg11[%c0_47, %c56], %53 {strides = array<i32>} : memref<128x72xbf16, #tpu.memory_space<vmem>>, vector<128x8xbf16>,
    %c2_48 = arith.constant 2 : index
    %c2_49 = arith.constant 2 : index
    %c0_50 = arith.constant 0 : index
    %55 = vector.load %arg10[%c2_48, %c2_49, %c0_50] : memref<10x18x8xbf16, #tpu.memory_space<vmem>>, vector<8x16x8xbf16>
    %56 = vector.shape_cast %55 : vector<8x16x8xbf16> to vector<128x8xbf16>
    %c0_51 = arith.constant 0 : index
    %c64 = arith.constant 64 : index
    %57 = vector.load %arg11[%c0_51, %c64] : memref<128x72xbf16, #tpu.memory_space<vmem>>, vector<128x8xbf16>
    tpu.vector_store %arg11[%c0_51, %c64], %56 {strides = array<i32>} : memref<128x72xbf16, #tpu.memory_space<vmem>>, vector<128x8xbf16>,
    %c0_52 = arith.constant 0 : index
    %c0_53 = arith.constant 0 : index
    %58 = vector.load %arg11[%c0_52, %c0_53] : memref<128x72xbf16, #tpu.memory_space<vmem>>, vector<128x72xbf16>
    %c0_54 = arith.constant 0 : index
    %c0_55 = arith.constant 0 : index
    %59 = vector.load %arg5[%c0_54, %c0_55] : memref<72x8xbf16, #tpu.memory_space<vmem>>, vector<72x8xbf16>
    %cst_56 = arith.constant dense<0.000000e+00> : vector<128x8xf32>
    %60 = tpu.matmul %58, %59, %cst_56 {dimension_numbers = #tpu.dot_dimension_numbers<[1], [0], [0], [1], [0, 0, 1, 1], [], []>} : vector<128x72xbf16>, vector<72x8xbf16>, vector<128x8xf32> -> vector<128x8xf32>
    %c0_57 = arith.constant 0 : index
    %c0_58 = arith.constant 0 : index
    %61 = vector.load %arg6[%c0_57, %c0_58] : memref<1x8xf32, #tpu.memory_space<vmem>>, vector<1x8xf32>
    %62 = vector.broadcast %61 : vector<1x8xf32> to vector<128x8xf32>
    %63 = arith.addf %60, %62 : vector<128x8xf32>
    %cst_59 = arith.constant 0.000000e+00 : f32
    %64 = vector.broadcast %cst_59 : f32 to vector<128x8xf32>
    %65 = arith.maximumf %63, %64 : vector<128x8xf32>
    %66 = arith.truncf %65 : vector<128x8xf32> to vector<128x8xbf16>
    %c0_60 = arith.constant 0 : index
    %c0_61 = arith.constant 0 : index
    %67 = vector.load %arg7[%c0_60, %c0_61] : memref<8x32xbf16, #tpu.memory_space<vmem>>, vector<8x32xbf16>
    %cst_62 = arith.constant dense<0.000000e+00> : vector<128x32xf32>
    %68 = tpu.matmul %66, %67, %cst_62 {dimension_numbers = #tpu.dot_dimension_numbers<[1], [0], [0], [1], [0, 0, 1, 1], [], []>} : vector<128x8xbf16>, vector<8x32xbf16>, vector<128x32xf32> -> vector<128x32xf32>
    %c1_i32_63 = arith.constant 1 : i32
    %69 = arith.addi %1, %c1_i32_63 : i32
    %c0_64 = arith.constant 0 : index
    %70 = arith.index_cast %69 : i32 to index
    %c0_65 = arith.constant 0 : index
    %c0_66 = arith.constant 0 : index
    %71 = vector.load %arg2[%c0_64, %70, %c0_65, %c0_66] : memref<1x18x16x32xbf16, #tpu.memory_space<vmem>>, vector<1x8x16x32xbf16>
    %72 = vector.shape_cast %71 : vector<1x8x16x32xbf16> to vector<8x16x32xbf16>
    %73 = vector.shape_cast %72 : vector<8x16x32xbf16> to vector<128x32xbf16>
    %74 = arith.extf %73 : vector<128x32xbf16> to vector<128x32xf32>
    %c0_67 = arith.constant 0 : index
    %c0_68 = arith.constant 0 : index
    %75 = vector.load %arg8[%c0_67, %c0_68] : memref<1x32xf32, #tpu.memory_space<vmem>>, vector<1x32xf32>
    %76 = vector.broadcast %75 : vector<1x32xf32> to vector<128x32xf32>
    %77 = arith.addf %68, %76 : vector<128x32xf32>
    %78 = arith.addf %77, %74 : vector<128x32xf32>
    %cst_69 = arith.constant 0.000000e+00 : f32
    %79 = vector.broadcast %cst_69 : f32 to vector<128x32xf32>
    %80 = arith.maximumf %78, %79 : vector<128x32xf32>
    %81 = vector.shape_cast %80 : vector<128x32xf32> to vector<8x16x32xf32>
    %82 = arith.truncf %81 : vector<8x16x32xf32> to vector<8x16x32xbf16>
    %c0_70 = arith.constant 0 : index
    %c0_71 = arith.constant 0 : index
    %c0_72 = arith.constant 0 : index
    %c0_73 = arith.constant 0 : index
    %83 = vector.load %arg9[%c0_70, %c0_71, %c0_72, %c0_73] : memref<1x8x16x32xbf16, #tpu.memory_space<vmem>>, vector<1x8x16x32xbf16>
    %84 = vector.shape_cast %83 : vector<1x8x16x32xbf16> to vector<8x16x32xbf16>
    %85 = vector.shape_cast %82 : vector<8x16x32xbf16> to vector<1x8x16x32xbf16>
    tpu.vector_store %arg9[%c0_70, %c0_71, %c0_72, %c0_73], %85 {strides = array<i32>} : memref<1x8x16x32xbf16, #tpu.memory_space<vmem>>, vector<1x8x16x32xbf16>,
    return
  }
  func.func @transform_0(%arg0: i32, %arg1: i32) -> (i32, i32, i32, i32) {
    %c0_i32 = arith.constant 0 : i32
    %c0_i32_0 = arith.constant 0 : i32
    %c0_i32_1 = arith.constant 0 : i32
    %c0_i32_2 = arith.constant 0 : i32
    return %arg0, %c0_i32, %c0_i32_0, %c0_i32_1 : i32, i32, i32, i32
  }
  func.func @transform_1(%arg0: i32, %arg1: i32) -> (i32, i32) {
    %c0_i32 = arith.constant 0 : i32
    %c0_i32_0 = arith.constant 0 : i32
    %c0_i32_1 = arith.constant 0 : i32
    return %c0_i32, %c0_i32_0 : i32, i32
  }
  func.func @transform_2(%arg0: i32, %arg1: i32) -> (i32, i32) {
    %c0_i32 = arith.constant 0 : i32
    %c0_i32_0 = arith.constant 0 : i32
    %c0_i32_1 = arith.constant 0 : i32
    return %c0_i32, %c0_i32_0 : i32, i32
  }
  func.func @transform_3(%arg0: i32, %arg1: i32) -> (i32, i32) {
    %c0_i32 = arith.constant 0 : i32
    %c0_i32_0 = arith.constant 0 : i32
    %c0_i32_1 = arith.constant 0 : i32
    return %c0_i32, %c0_i32_0 : i32, i32
  }
  func.func @transform_4(%arg0: i32, %arg1: i32) -> (i32, i32) {
    %c0_i32 = arith.constant 0 : i32
    %c0_i32_0 = arith.constant 0 : i32
    %c0_i32_1 = arith.constant 0 : i32
    return %c0_i32, %c0_i32_0 : i32, i32
  }
  func.func @transform_5(%arg0: i32, %arg1: i32) -> (i32, i32) {
    %c0_i32 = arith.constant 0 : i32
    %c0_i32_0 = arith.constant 0 : i32
    %c0_i32_1 = arith.constant 0 : i32
    return %c0_i32, %c0_i32_0 : i32, i32
  }
  func.func @transform_6(%arg0: i32, %arg1: i32) -> (i32, i32) {
    %c0_i32 = arith.constant 0 : i32
    %c0_i32_0 = arith.constant 0 : i32
    %c0_i32_1 = arith.constant 0 : i32
    return %c0_i32, %c0_i32_0 : i32, i32
  }
  func.func @transform_7(%arg0: i32, %arg1: i32) -> (i32, i32, i32, i32) {
    %c0_i32 = arith.constant 0 : i32
    %c0_i32_0 = arith.constant 0 : i32
    %c0_i32_1 = arith.constant 0 : i32
    return %arg0, %arg1, %c0_i32, %c0_i32_0 : i32, i32, i32, i32
  }
}

</mosaic_0001>

<bundles_post_ra>
// kernel: tpu_custom_call.1
= control target key start
LH: loop header
LB: loop body
LE: loop exit
PB: predicated region body
PF: predicated region fallthrough
CT: control target
= control target key end

     0   :  { %12 = vsyncpa [#allocation5], 0  ;;  %s5108_s0 = inlined_call_operand.hbm [shape: bf16[2,18,16,32], index: 0, kind: input, shape index: {}]   ;;  %s5109_s1 = inlined_call_operand.vmem [shape: bf16[32,8], index: 1, kind: input, shape index: {}]   ;;  %s5110_s2 = inlined_call_operand.vmem [shape: f32[1,8], index: 2, kind: input, shape index: {}]   ;;  %s5111_s3 = inlined_call_operand.vmem [shape: bf16[72,8], index: 3, kind: input, shape index: {}]   ;;  %s5112_s4 = inlined_call_operand.vmem [shape: f32[1,8], index: 4, kind: input, shape index: {}]   ;;  %s5113_s5 = inlined_call_operand.vmem [shape: bf16[8,32], index: 5, kind: input, shape index: {}]   ;;  %s5114_s6 = inlined_call_operand.vmem [shape: f32[1,32], index: 6, kind: input, shape index: {}]   ;;  %s5115_s7 = inlined_call_operand.hbm [shape: bf16[2,16,16,32], index: 7, kind: output, shape index: {}]  }
   0x1   :  { %14 = vsyncpa [#allocation5 + $0x1], 0 }
   0x2   :  { %15 = vsyncpa [#allocation6], 0 }
   0x3   :  { %17 = vsyncpa [#allocation6 + $0x1], 0  ;;  %s3972_s24 = smov 0   ;;  %s3974_s25 = smov 0  }
   0x4   :  { %s3976_s26 = smov 0   ;;  %s3978_s27 = smov 0  }
   0x5   :  { %s3980_s28 = smov 0   ;;  %s3982_s29 = smov 0  }
   0x6   :  { %s3984_s30 = smov 0   ;;  %s3986_s8 = smov 0  }
   0x7   :  { %s3988_s9 = smov 0   ;;  %s3990_s10 = smov 0  }
   0x8   :  { %s3992_s11 = smov 0  }
   0x9 LB: > { %5122 = sst [smem:[#allocation10_spill]] %s3897_s29  ;;  %s3207_s12 = sadd.s32 4294967295, %s3917_s11   ;;  %s3917_s11 = sphi %s3992_s11, %s23_s11   ;;  %s3913_s10 = sphi %s3990_s10, %s5173_s10   ;;  %s3909_s9 = sphi %s3988_s9, %s5172_s9   ;;  %s3905_s8 = sphi %s3986_s8, %s5171_s8   ;;  %s3901_s30 = sphi %s3984_s30, %s5170_s30   ;;  %s3897_s29 = sphi %s3982_s29, %s5169_s29   ;;  %s3893_s28 = sphi %s3980_s28, %s5178_s28   ;;  %s3889_s27 = sphi %s3978_s27, %s5177_s27   ;;  %s3885_s26 = sphi %s3976_s26, %s5176_s26   ;;  %s3881_s25 = sphi %s3974_s25, %s5175_s25   ;;  %s3877_s24 = sphi %s3972_s24, %s5174_s24  }
   0xa   : > { %5123 = sst [smem:[#allocation11_spill]] %s3909_s9  ;;  %s3208_s13 = sadd.s32 4294967294, %s3917_s11  }
   0xb   : > { %5124 = sst [smem:[#allocation12_spill]] %s3913_s10  ;;  %s32_s14 = sadd.s32 1, %s3909_s9 }
   0xc   : > { %s35_s15 = sadd.s32 1, %s3913_s10  ;;  %p33_p0 = scmp.ge.s32.totalorder %s32_s14, 2 }
   0xd   : > { %s42_s16 = sadd.s32 1, %s3897_s29  ;;  %p49_p1 = scmp.ne.s32.totalorder %s3897_s29, %s3893_s28 }
   0xe   : > { %p50_p2 = scmp.eq.s32.totalorder %s3917_s11, 0  ;;  %s5180_s14 = smov (%p33_p0, %s32_s14), 0 }
   0xf   : > { %5125 = sst [smem:[#allocation13_spill]] %s5180_s14  ;;  %s5182_s15 = smov (!%p33_p0, %s35_s15), %s3913_s10 }
  0x10   : > { %p4036_p3 = por %p50_p2, %p49_p1  ;;  %p55_p4 = scmp.ne.s32.totalorder %s3893_s28, %s3889_s27 }
  0x11   : > { %p37_p5 = scmp.ge.s32.totalorder %s5182_s15, 2  ;;  %p56_p6 = scmp.eq.s32.totalorder %s3207_s12, 0 }
  0x12   : > { %s192_s18 = ssub.s32 %s3909_s9, %s5180_s14  ;;  %s196_s19 = sadd.s32 1, %s3885_s26 }
  0x13   : > { %s5184_s15 = smov (%p37_p5, %s5182_s15), 0  ;;  %p4046_p7 = por %p56_p6, %p55_p4 }
  0x14   : > { %5127 = sst [smem:[#allocation14_spill]] %s5184_s15  ;;  %p206_p8 = scmp.ne.s32.totalorder %s3885_s26, %s3881_s25 }
  0x15   : > { %s39_s21 = ssub.s32 %s3913_s10, %s5184_s15  ;;  %p207_p9 = scmp.eq.s32.totalorder %s3207_s12, 3 }
  0x16   : > { %p40_p10 = scmp.eq.s32.totalorder %s39_s21, 0  ;;  %s193_s22 = sor.u32 %s192_s18, %s39_s21 }
  0x17   : > { %p194_p11 = scmp.eq.s32.totalorder %s193_s22, 0  ;;  %p4054_p12 = por %p207_p9, %p206_p8 }
  0x18   : > { %s4059_s27 = scalar_select %p40_p10, %s3897_s29, %s42_s16  }
  0x19   : > { %s5129_s23 = scalar_select %p4054_p12, 1, 0 }
  0x1a   : > { %5130 = sst [smem:[#allocation15_spill]] %s4059_s27  ;;  %p212_p13 = scmp.ne.s32.totalorder %s3881_s25, %s3877_s24 }
  0x1b   : > { %s4062_s14 = scalar_select %p194_p11, %s3885_s26, %s196_s19  }
  0x1c   : > { %p213_p0 = scmp.eq.s32.totalorder %s3208_s13, 3  ;;  %p3623_p1 = scmp.lt.s32.totalorder %s3917_s11, 4 }
  0x1d   : > { %s251_s12 = sand.u32 1, %s3897_s29   ;;  %s3609_s18 = smul.u32 2304, %s3913_s10 }
  0x1e   : > { %p4067_p2 = por %p213_p0, %p212_p13  ;;  %s3608_s15 = smul.u32 144, %s251_s12 }
  0x1f   : > { %p4075_p4 = pnand %p3623_p1, %p4036_p3  ;;  %s4082_s19 = scalar_lea.hbm %s5108_s0, %s3609_s18 }
  0x20   : > { %s5131_s9 = scalar_select %p4067_p2, 1, 0 }
  0x21   : > { %s255_s13 = scalar_lea.vmem [#allocation4], %s3608_s15  ;;  %s4087_s17 = scalar_lea.sflag [#allocation5], %s251_s12 }
  0x22   : > { %s262_s27 = sshll.u32 %s255_s13, 4  ;;  %s3765_s10 = scalar_lea.hbm %s4082_s19, 2304  ;;  %s4084_s27 = int_to_ptr.vmem [resolvable:$true] %s262_s27 }
  0x23   : > { %p3766_p3 = scmp.ne.s32.totalorder %s4082_s19, %s3765_s10  ;;  %p3767_p6 = pneg %p4075_p4 }
  0x24   : > { %s3770_s16 = scalar_lea.hbm %s5108_s0, 4608  ;;  %p3771_p10 = scmp.lt.u32.totalorder %s4082_s19, %s5108_s0 }
  0x25   : > { %p3768_p8 = pnand %p3767_p6, %p3766_p3  ;;  %p3772_p11 = scmp.lt.u32.totalorder %s3770_s16, %s3765_s10 }
  0x26   : > { %p3774_p0 = scmp.lt.u32.totalorder %s3765_s10, %s4082_s19 }
  0x27   : > { %p3769_p9 = pneg %p3768_p8  ;;  %p3773_p13 = por %p3772_p11, %p3771_p10 }
  0x29   : > { %p3775_p1 = por %p3774_p0, %p3773_p13 }
  0x2b   : > { %p3776_p5 = pnand %p3775_p1, %p3769_p9 }
  0x2d   : > { %3779 = shalt.err (!%p3776_p5)
}
  0x2e   : > { %s3780_s12 = scalar_lea.vmem %s4084_s27, 2304  ;;  %s3919_s13 = smov [#allocation4]  }
  0x2f   : > { %p3781_p3 = scmp.ne.s32.totalorder %s4084_s27, %s3780_s12  ;;  %s3785_s18 = sshll.u32 %s3919_s13, 4  ;;  %s3786_s18 = int_to_ptr.vmem [resolvable:$false] %s3785_s18 }
  0x30   : > { %s3787_s29 = scalar_lea.vmem %s3786_s18, 4608  ;;  %p3788_p12 = scmp.lt.s32.totalorder %s4084_s27, %s3786_s18 }
  0x31   : > { %p3783_p8 = pnand %p3781_p3, %p3767_p6  ;;  %p3789_p10 = scmp.lt.s32.totalorder %s3787_s29, %s3780_s12 }
  0x33   : > { %p3784_p2 = pneg %p3783_p8  ;;  %p3790_p11 = por %p3789_p10, %p3788_p12 }
  0x35   : > { %p3791_p13 = pnand %p3790_p11, %p3784_p2 }
  0x37   : > { %3794 = shalt.err (!%p3791_p13)
}
  0x38   : > { %s3920_s10 = smov 64   ;;  %s3921_s22 = smov 4  }
  0x39   : > { %3618 = dma.hbm_to_vmem [thread:$0]  (!%p4075_p4), %s4082_s19, 2304, %s4084_s27, %s4087_s17, %s3920_s10, %s3920_s10, %s3921_s22  }
  0x3a   : > { %p270_p5 = scmp.lt.s32.totalorder %s3917_s11, 5  ;;  %p5133_p6 = scmp.ge.s32.totalorder %s3917_s11, 1 }
  0x3c   : > { %p271_p9 = pnand %p5133_p6, %p270_p5 }
  0x3d   : > { %s276_s16 = sand.u32 (!%p271_p9), 1, %s3893_s28  }
  0x3e   : > { %274 = sbr.rel (%p271_p9) target bundleno = 1094 (0x446), region = 48  ;;  %s277_s12 = scalar_lea.sflag (!%p271_p9), [#allocation5], %s276_s16 }
  0x3f   : > { %s3610_s15 = smul.u32 (!%p271_p9), 144, %s276_s16 }
  0x41   : > { %s280_s13 = scalar_lea.vmem (!%p271_p9), [#allocation4], %s3610_s15 }
  0x45   : > { %3868 = dma.done.wait (%p4046_p7), %s277_s12, 2304  }
  0x46   : > { %3870 = vsyncadd (%p4046_p7), %s277_s12, 4294964992  ;;  %s3421_s18 = sshll.u32 %s3901_s30, 6  ;;  %v3724_v0 = vld [vmem:[%s5109_s1] sm:$0xff]   ;;  %v3725_v1 = vld [vmem:[%s5109_s1 + $0x8] sm:$0xff]   ;;  %vm410_vm0 = vcmask 261120   ;;  %s3214_s20 = sshll.u32 %s3901_s30, 3 }
  0x47   : > { %s4124_s29 = scalar_lea.vmem %s280_s13, %s3421_s18 [#allocation4]  ;;  %3534 = vmatprep.subr.bf16.mxu0 %v3724_v0  ;;  %3602 = vmatprep.subr.bf16.mxu1 %v3724_v0  ;;  %v574_v12 = vstv %s3214_s20  ;;  %v4156_v16 = vld [vmem:[%s5110_s2] ss:$0 sm:$0xff]  ;;  %vm917_vm10 = vcmask 60416   ;;  %vm918_vm11 = vsmask.f32 7938  ;;  %s3922_s16 = smov 48  }
  0x48   : > { %v3726_v2 = vld [vmem:[%s4124_s29] sm:$0xff]   ;;  %3535 = vmatpush3.bf16.msra.mxu0 %v3724_v0  ;;  %3604 = vmatpush3.bf16.msra.mxu1 %v3724_v0  ;;  %v3727_v3 = vld [vmem:[%s4124_s29 + $0x30] sm:$0xff]   ;;  %v3728_v4 = vld [vmem:[%s4124_s29 + $0x8] sm:$0xff]   ;;  %v575_v13 = vadd.s32 1, %v574_v12  ;;  %v581_v14 = vadd.s32 7, %v574_v12  ;;  %v580_v15 = vadd.s32 6, %v574_v12 }
  0x49   : > { %3536 = vmatprep.subr.bf16.mxu0 %v3725_v1  ;;  %3603 = vmatprep.subr.bf16.mxu1 %v3725_v1  ;;  %v3729_v5 = vld [vmem:[%s4124_s29 + $0x38] sm:$0xff]   ;;  %v3730_v6 = vld [vmem:[%s4124_s29 + $0x10] sm:$0xff]   ;;  %v3732_v7 = vld [vmem:[%s4124_s29 + $0x40] sm:$0xff]   ;;  %vm584_vm5 = vcmp.ge.s32.totalorder %v574_v12, 1  ;;  %vm594_vm6 = vcmp.le.s32.totalorder %v574_v12, 16  ;;  %v4162_v20 = vadd.s32 3, %v574_v12 }
  0x4a   : > { %3538 = vmatprep.mubr.msk.bf16.mxu0 %vm410_vm0, %v3726_v2  ;;  %3550 = vmatprep.mubr.msk.bf16.mxu1 %vm410_vm0, %v3727_v3  ;;  %v3731_v8 = vld [vmem:[%s4124_s29 + $0x18] sm:$0xff]   ;;  %v3733_v9 = vld [vmem:[%s4124_s29 + $0x48] sm:$0xff]   ;;  %v3734_v10 = vld [vmem:[%s4124_s29 + $0x20] sm:$0xff]   ;;  %vm585_vm1 = vcmp.ge.s32.totalorder %v575_v13, 1  ;;  %vm595_vm2 = vcmp.le.s32.totalorder %v575_v13, 16  ;;  %vm591_vm3 = vcmp.ge.s32.totalorder %v581_v14, 1 }
  0x4b   : > { %v3735_v11 = vld [vmem:[%s4124_s29 + $0x28] sm:$0xff]   ;;  %vm601_vm4 = vcmp.le.s32.totalorder %v581_v14, 16  ;;  %vm590_vm7 = vcmp.ge.s32.totalorder %v580_v15, 1  ;;  %vm600_vm8 = vcmp.le.s32.totalorder %v580_v15, 16  ;;  %vm4158_vm9 = vmand %vm585_vm1, %vm595_vm2  ;;  %v4164_v21 = vadd.s32 2, %v574_v12  ;;  %s3923_s15 = smov 24  }
  0x4c   : > { %3537 = vmatpush3.bf16.msra.mxu0 %v3725_v1  ;;  %3605 = vmatpush3.bf16.msra.mxu1 %v3725_v1  ;;  %vm4169_vm12 = vmand %vm591_vm3, %vm601_vm4  ;;  %v4173_v27 = vadd.s32 9, %v574_v12  ;;  %v4175_v28 = vadd.s32 8, %v574_v12  ;;  %v4185_v34 = vadd.s32 5, %v574_v12  ;;  %v4187_v35 = vadd.s32 4, %v574_v12  ;;  %v930_v1 = vld [vmem:[#allocation2 + $0xc] sm:$0xf] }
  0x4d   : > { %vm4180_vm13 = vmand %vm584_vm5, %vm594_vm6  ;;  %vm714_vm15 = vsmask.f32 256  ;;  %vm715_vm1 = vsmask.f32 4368  ;;  %vm587_vm2 = vcmp.ge.s32.totalorder %v4162_v20, 1  ;;  %vm597_vm3 = vcmp.le.s32.totalorder %v4162_v20, 16 }
  0x4e   : > { %vm4191_vm14 = vmand %vm590_vm7, %vm600_vm8  ;;  %vm586_vm5 = vcmp.ge.s32.totalorder %v4164_v21, 1  ;;  %vm596_vm6 = vcmp.le.s32.totalorder %v4164_v21, 16  ;;  %s3924_s12 = smov 16   ;;  %s3925_s13 = smov 40  }
  0x4f   : > { %3539 = vmatmul.mubr.msk.bf16.vlgmr.msra.gmra.mrb[0].mxu0 %vm410_vm0, %v3728_v4  ;;  %3551 = vmatmul.mubr.msk.bf16.vlgmr.msra.gmra.mrb[0].mxu1 %vm410_vm0, %v3729_v5  ;;  %vm4229_vm4 = vmand %vm917_vm10, %vm918_vm11  ;;  %s3926_s18 = smov 64   ;;  %s3927_s27 = smov 8  }
  0x50   : > { %3542 = vmatprep.mubr.msk.bf16.mxu0 %vm410_vm0, %v3730_v6  ;;  %3554 = vmatprep.mubr.msk.bf16.mxu1 %vm410_vm0, %v3732_v7  ;;  %vm4276_vm8 = vmor %vm714_vm15, %vm715_vm1  ;;  %s3928_s21 = smov 56   ;;  %s3929_s19 = smov 32  }
  0x51   : > { %vm4324_vm1 = vmand %vm586_vm5, %vm596_vm6  ;;  %vm589_vm6 = vcmp.ge.s32.totalorder %v4185_v34, 1  ;;  %s308_s20 = sand.u32 1, %s3881_s25   ;;  %p5166_p12 = scmp.ne.s32.totalorder %s5129_s23, 0 }
  0x52   : > { %s3930_s17 = smov [#allocation7]  }
  0x57   : > { %3543 = vmatmul.mubr.msk.bf16.gmra.mrb[4].mxu0 %vm410_vm0, %v3731_v8  ;;  %3555 = vmatmul.mubr.msk.bf16.gmra.mrb[4].mxu1 %vm410_vm0, %v3733_v9 }
  0x58   : > { %3546 = vmatprep.mubr.msk.bf16.mxu0 %vm410_vm0, %v3734_v10  ;;  %v972_v10 = vld [vmem:[#allocation2 + $0x54] sm:$0xf] }
  0x5f   : > { %3547 = vmatmul.mubr.msk.bf16.gmra.mrb[8].mxu0 %vm410_vm0, %v3735_v11  ;;  %vm925_vm0 = vcmask 57344  }
  0x60   : > { %vm4263_vm7 = vmand %vm925_vm0, %vm714_vm15  ;;  %vm602_vm15 = vcmp.le.s32.totalorder %v4175_v28, 16 }
 0x122   : > { %v3540_v17 = vpop.f32.mrb[0].mxu0  ;;  %v3552_v19 = vpop.f32.mrb[0].mxu1 }
 0x123   : > { %v484_v22 = vadd.f32 %v3540_v17, %v4156_v16  ;;  %v532_v23 = vadd.f32 %v3552_v19, %v4156_v16  ;;  %v475_v25 = vpop.f32.mrb[1].mxu0  ;;  %v523_v26 = vpop.f32.mrb[1].mxu1 }
 0x124   : > { %v476_v29 = vadd.f32 %v4156_v16, %v475_v25  ;;  %v524_v31 = vadd.f32 %v4156_v16, %v523_v26  ;;  %v3541_v32 = vpop.f32.mrb[2].mxu0  ;;  %v3553_v33 = vpop.f32.mrb[2].mxu1 }
 0x125   : > { %v556_v36 = vmax.f32 %v484_v22, 0.0  ;;  %v568_v37 = vmax.f32 %v532_v23, 0.0  ;;  %v487_v39 = vadd.f32 %v3541_v32, %v4156_v16  ;;  %v535_v40 = vadd.f32 %v3553_v33, %v4156_v16  ;;  %v478_v41 = vpop.f32.mrb[3].mxu0  ;;  %v526_v42 = vpop.f32.mrb[3].mxu1  ;;  %v920_v32 = vld [vmem:[#allocation2] sm:$0xf] }
 0x126   : > { %v554_v43 = vmax.f32 %v476_v29, 0.0  ;;  %v566_v44 = vmax.f32 %v524_v31, 0.0  ;;  %v4198_v45 = vadd.f32 %v4156_v16, %v478_v41  ;;  %v4201_v46 = vadd.f32 %v4156_v16, %v526_v42  ;;  %v965_v33 = vld [vmem:[#allocation2 + $0x48] sm:$0xf] }
 0x127   : > { %v636_v47 = vsel %vm4158_vm9, %v556_v36, 0.0  ;;  %v648_v48 = vsel %vm4169_vm12, %v568_v37, 0.0  ;;  %v557_v49 = vmax.f32 %v487_v39, 0.0  ;;  %v569_v50 = vmax.f32 %v535_v40, 0.0 }
 0x128   : > { %v3424_v51 = vpack.c.bf16 %v636_v47, %v636_v47  ;;  %v3436_v52 = vpack.c.bf16 %v648_v48, %v648_v48  ;;  %v634_v53 = vsel %vm4180_vm13, %v554_v43, 0.0  ;;  %v646_v54 = vsel %vm4191_vm14, %v566_v44, 0.0 }
 0x129   : > { %v3422_v55 = vpack.c.bf16 %v634_v53, %v634_v53  ;;  %v3434_v56 = vpack.c.bf16 %v646_v54, %v646_v54  ;;  %v637_v57 = vsel %vm4158_vm9, %v557_v49, 0.0  ;;  %v649_v58 = vsel %vm4169_vm12, %v569_v50, 0.0 }
 0x12a   : > { %v735_v59 = vshrl.u32 %v3424_v51, 16  ;;  %v738_v60 = vshll.u32 %v3424_v51, 16  ;;  %v837_v61 = vshrl.u32 %v3436_v52, 16  ;;  %v840_v62 = vshll.u32 %v3436_v52, 16  ;;  %v3544_v63 = vpop.f32.mrb[4].mxu0  ;;  %v4217_v0 = vpop.f32.mrb[4].mxu1 }
 0x12b   : > { %v718_v2 = vshrl.u32 %v3422_v55, 16  ;;  %v721_v3 = vshll.u32 %v3422_v55, 16  ;;  %v820_v4 = vshrl.u32 %v3434_v56, 16  ;;  %v823_v5 = vshll.u32 %v3434_v56, 16  ;;  %v491_v6 = vpop.f32.mrb[5].mxu0  ;;  %v4219_v7 = vpop.f32.mrb[5].mxu1 }
 0x12c   : > { %v4221_v8 = vrot.slane %v735_v59, 7  ;;  %v4223_v9 = vrot.slane %v837_v61, 7  ;;  %v3425_v11 = vpack.c.bf16 %v637_v57, %v637_v57  ;;  %v3437_v12 = vpack.c.bf16 %v649_v58, %v649_v58  ;;  %v3545_v13 = vpop.f32.mrb[6].mxu0  ;;  %v4225_v14 = vpop.f32.mrb[6].mxu1  ;;  %v934_v56 = vld [vmem:[#allocation2 + $0x14] sm:$0x1] }
 0x12d   : > { %v4233_v17 = vrot.slane %v718_v2, 7  ;;  %v4235_v18 = vrot.slane %v820_v4, 7  ;;  %v555_v19 = vmax.f32 %v4198_v45, 0.0  ;;  %v567_v22 = vmax.f32 %v4201_v46, 0.0  ;;  %v4239_v23 = vpop.f32.mrb[7].mxu0  ;;  %v4241_v24 = vpop.f32.mrb[7].mxu1 }
 0x12e   : > { %v740_v25 = vor.u32 %v738_v60, %v4221_v8  ;;  %v741_v26 = vrot.slane %v4221_v8, 4  ;;  %v842_v29 = vor.u32 %v840_v62, %v4223_v9  ;;  %v843_v31 = vrot.slane %v4223_v9, 4  ;;  %v976_v62 = vld [vmem:[#allocation2 + $0x5c] sm:$0x1] }
 0x12f   : > { %v723_v36 = vor.u32 %v721_v3, %v4233_v17  ;;  %v724_v37 = vrot.slane %v4233_v17, 4  ;;  %v825_v39 = vor.u32 %v823_v5, %v4235_v18  ;;  %v826_v40 = vrot.slane %v4235_v18, 4 }
 0x130   : > { %v931_v41 = vsel %vm4229_vm4, %v740_v25, %v930_v1  ;;  %v973_v42 = vsel %vm4229_vm4, %v842_v29, %v972_v10  ;;  %v743_v43 = vshrl.u32 %v3425_v11, 16  ;;  %v746_v44 = vshll.u32 %v3425_v11, 16  ;;  %v927_v25 = vld [vmem:[#allocation2 + $0x8] sm:$0x1] }
 0x131   : > { %932 = vst [vmem:[#allocation2 + $0xc] sm:$0xf] %v931_v41  ;;  %974 = vst [vmem:[#allocation2 + $0x54] sm:$0xf] %v973_v42  ;;  %v921_v45 = vsel %vm4229_vm4, %v723_v36, %v920_v32  ;;  %v966_v46 = vsel %vm4229_vm4, %v825_v39, %v965_v33  ;;  %v845_v47 = vshrl.u32 %v3437_v12, 16  ;;  %v848_v48 = vshll.u32 %v3437_v12, 16 }
 0x132   : > { %922 = vst [vmem:[#allocation2] sm:$0xf] %v921_v45  ;;  %967 = vst [vmem:[#allocation2 + $0x48] sm:$0xf] %v966_v46  ;;  %v745_v50 = vrot.slane %v743_v43, 7  ;;  %v635_v51 = vsel %vm4180_vm13, %v555_v19, 0.0  ;;  %v500_v53 = vadd.f32 %v3544_v63, %v4156_v16  ;;  %v492_v30 = vadd.f32 %v4156_v16, %v491_v6 }
 0x133   : > { %v647_v52 = vsel %vm4191_vm14, %v567_v22, 0.0  ;;  %v4272_v54 = vpop.f32.mrb[8].mxu0  ;;  %v847_v57 = vrot.slane %v845_v47, 7  ;;  %v3423_v58 = vpack.c.bf16 %v635_v51, %v635_v51  ;;  %vm593_vm9 = vcmp.ge.s32.totalorder %v4173_v27, 1  ;;  %vm4289_vm13 = vmand %vm587_vm2, %vm597_vm3 }
 0x134   : > { %v3435_v59 = vpack.c.bf16 %v647_v52, %v647_v52  ;;  %vm603_vm12 = vcmp.le.s32.totalorder %v4173_v27, 16  ;;  %v4283_v38 = vpop.f32.mrb[9].mxu0  ;;  %v748_v60 = vor.u32 %v746_v44, %v745_v50  ;;  %v750_v61 = vrot.slane %v745_v50, 4  ;;  %v969_v52 = vld [vmem:[#allocation2 + $0x50] sm:$0x1]  ;;  %vm4340_vm2 = vmand %vm925_vm0, %vm918_vm11 }
 0x135   : > { %v560_v63 = vmax.f32 %v500_v53, 0.0  ;;  %v4294_v2 = vadd.f32 %v3545_v13, %v4156_v16  ;;  %v4296_v3 = vpop.f32.mrb[10].mxu0  ;;  %v850_v4 = vor.u32 %v848_v48, %v847_v57  ;;  %v852_v5 = vrot.slane %v847_v57, 4  ;;  %vm4365_vm11 = vmand %vm593_vm9, %vm603_vm12 }
 0x136   : > { %v726_v6 = vshrl.u32 %v3423_v58, 16  ;;  %v729_v8 = vshll.u32 %v3423_v58, 16  ;;  %vm592_vm14 = vcmp.ge.s32.totalorder %v4175_v28, 1  ;;  %v4300_v9 = vpop.f32.mrb[11].mxu0  ;;  %v749_v20 = vsel %vm4276_vm8, %v741_v26, %v748_v60 }
 0x137   : > { %v935_v10 = vsel %vm4263_vm7, %v750_v61, %v934_v56  ;;  %v828_v11 = vshrl.u32 %v3435_v59, 16  ;;  %v831_v12 = vshll.u32 %v3435_v59, 16  ;;  %933 = vst.msk [vmem:[#allocation2 + $0x10] sm:$0xf] %vm917_vm10, %v749_v20  ;;  %v851_v13 = vsel %vm4276_vm8, %v843_v31, %v850_v4  ;;  %v944_v61 = vld [vmem:[#allocation2 + $0x24] sm:$0xf]  ;;  %vm4387_vm5 = vmand %vm592_vm14, %vm602_vm15 }
 0x138   : > { %936 = vst [vmem:[#allocation2 + $0x14] sm:$0x1] %v935_v10  ;;  %v977_v19 = vsel %vm4263_vm7, %v852_v5, %v976_v62  ;;  %v728_v22 = vrot.slane %v726_v6, 7  ;;  %v640_v29 = vsel %vm4289_vm13, %v560_v63, 0.0  ;;  %v996_v26 = vld [vmem:[#allocation2 + $0xc] sm:$0x1]  ;;  %v495_v41 = vadd.f32 %v4156_v16, %v4239_v23 }
 0x139   : > { %v1014_v32 = vld [vmem:[#allocation2 + $0x54] sm:$0x1]  ;;  %975 = vst.msk [vmem:[#allocation2 + $0x58] sm:$0xf] %vm917_vm10, %v851_v13  ;;  %978 = vst [vmem:[#allocation2 + $0x5c] sm:$0x1] %v977_v19  ;;  %v3428_v36 = vpack.c.bf16 %v640_v29, %v640_v29  ;;  %v548_v23 = vadd.f32 %v4217_v0, %v4156_v16  ;;  %v540_v5 = vadd.f32 %v4156_v16, %v4219_v7 }
 0x13a   : > { %v830_v33 = vrot.slane %v828_v11, 7  ;;  %v558_v39 = vmax.f32 %v492_v30, 0.0  ;;  %v997_v31 = vsel %vm4263_vm7, 0, %v996_v26  ;;  %v1015_v42 = vsel %vm4263_vm7, 0, %v1014_v32  ;;  %v993_v43 = vld [vmem:[#allocation2] sm:$0x1] }
 0x13b   : > { %v1011_v44 = vld [vmem:[#allocation2 + $0x48] sm:$0x1]  ;;  %v731_v45 = vor.u32 %v729_v8, %v728_v22  ;;  %998 = vst [vmem:[#allocation2 + $0xc] sm:$0x1] %v997_v31  ;;  %1016 = vst [vmem:[#allocation2 + $0x54] sm:$0x1] %v1015_v42  ;;  %v4373_v6 = vadd.f32 %v4225_v14, %v4156_v16 }
 0x13c   : > { %v994_v47 = vsel %vm4263_vm7, 0, %v993_v43  ;;  %v1012_v48 = vsel %vm4263_vm7, 0, %v1011_v44  ;;  %v733_v50 = vrot.slane %v728_v22, 4  ;;  %v833_v51 = vor.u32 %v831_v12, %v830_v33  ;;  %v937_v12 = vld [vmem:[#allocation2 + $0x18] sm:$0xf] }
 0x13d   : > { %995 = vst [vmem:[#allocation2] sm:$0x1] %v994_v47  ;;  %1013 = vst [vmem:[#allocation2 + $0x48] sm:$0x1] %v1012_v48  ;;  %v732_v21 = vsel %vm4276_vm8, %v724_v37, %v731_v45  ;;  %v835_v53 = vrot.slane %v830_v33, 4  ;;  %v769_v0 = vshrl.u32 %v3428_v36, 16 }
 0x13e   : > { %v772_v56 = vshll.u32 %v3428_v36, 16  ;;  %924 = vst.msk [vmem:[#allocation2 + $0x4] sm:$0xf] %vm917_vm10, %v732_v21  ;;  %v928_v58 = vsel %vm4263_vm7, %v733_v50, %v927_v25  ;;  %v834_v17 = vsel %vm4276_vm8, %v826_v40, %v833_v51  ;;  %v638_v37 = vsel %vm4324_vm1, %v558_v39, 0.0  ;;  %v948_v43 = vld [vmem:[#allocation2 + $0x2c] sm:$0x1] }
 0x13f   : > { %v561_v59 = vmax.f32 %v4294_v2, 0.0  ;;  %929 = vst [vmem:[#allocation2 + $0x8] sm:$0x1] %v928_v58  ;;  %968 = vst.msk [vmem:[#allocation2 + $0x4c] sm:$0xf] %vm917_vm10, %v834_v17  ;;  %v970_v30 = vsel %vm4263_vm7, %v835_v53, %v969_v52  ;;  %v4357_v60 = vrot.slane %v769_v0, 7  ;;  %v3426_v62 = vpack.c.bf16 %v638_v37, %v638_v37 }
 0x140   : > { %v559_v63 = vmax.f32 %v495_v41, 0.0  ;;  %v1027_v18 = vld [vmem:[#allocation2 + $0x14] sm:$0x1]  ;;  %971 = vst [vmem:[#allocation2 + $0x50] sm:$0x1] %v970_v30  ;;  %v572_v4 = vmax.f32 %v548_v23, 0.0 }
 0x141   : > { %v641_v40 = vsel %vm4289_vm13, %v561_v59, 0.0  ;;  %v1028_v1 = vsel %vm4340_vm2, 0, %v1027_v18  ;;  %v1045_v8 = vld [vmem:[#allocation2 + $0x5c] sm:$0x1]  ;;  %v774_v20 = vor.u32 %v772_v56, %v4357_v60  ;;  %v775_v10 = vrot.slane %v4357_v60, 4 }
 0x142   : > { %v752_v27 = vshrl.u32 %v3426_v62, 16  ;;  %vm1451_vm0 = vcmask 1042432   ;;  %vm1452_vm3 = vcmask 1046532   ;;  %1029 = vst [vmem:[#allocation2 + $0x14] sm:$0x1] %v1028_v1  ;;  %v1046_v11 = vsel %vm4340_vm2, 0, %v1045_v8 }
 0x143   : > { %v755_v7 = vshll.u32 %v3426_v62, 16  ;;  %v3429_v13 = vpack.c.bf16 %v641_v40, %v641_v40  ;;  %v639_v14 = vsel %vm4324_vm1, %v559_v63, 0.0  ;;  %1047 = vst [vmem:[#allocation2 + $0x5c] sm:$0x1] %v1046_v11  ;;  %v945_v22 = vsel %vm4229_vm4, %v774_v20, %v944_v61  ;;  %v3736_v32 = vld [vmem:[#allocation2 + $0x54] sm:$0xff]   ;;  %v3737_v33 = vld [vmem:[#allocation2 + $0xc] sm:$0xff]   ;;  %vm4434_vm12 = vmor %vm1451_vm0, %vm1452_vm3 }
 0x144   : > { %v754_v25 = vrot.slane %v752_v27, 7  ;;  %v3427_v29 = vpack.c.bf16 %v639_v14, %v639_v14  ;;  %v652_v26 = vsel %vm4365_vm11, %v572_v4, 0.0  ;;  %946 = vst [vmem:[#allocation2 + $0x24] sm:$0xf] %v945_v22  ;;  %v570_v28 = vmax.f32 %v540_v5, 0.0  ;;  %2158 = vrot.lane.b32.xlu1 %v3736_v32, %s3922_s16  ;;  %1624 = vrot.lane.b32.xlu0 %v3737_v33, %s3923_s15  ;;  %v3739_v46 = vld [vmem:[#allocation2 + $0x54] sm:$0xff]  }
 0x145   : > { %v777_v36 = vshrl.u32 %v3429_v13, 16  ;;  %v780_v39 = vshll.u32 %v3429_v13, 16  ;;  %v3440_v41 = vpack.c.bf16 %v652_v26, %v652_v26  ;;  %vm599_vm9 = vcmp.le.s32.totalorder %v4185_v34, 16  ;;  %v941_v48 = vld [vmem:[#allocation2 + $0x20] sm:$0x1] }
 0x146   : > { %v757_v31 = vor.u32 %v755_v7, %v754_v25  ;;  %v758_v42 = vrot.slane %v754_v25, 4  ;;  %v760_v44 = vshrl.u32 %v3427_v29, 16  ;;  %v763_v45 = vshll.u32 %v3427_v29, 16  ;;  %v1024_v23 = vld [vmem:[#allocation2 + $0x8] sm:$0x1]  ;;  %vm4459_vm13 = vmand %vm589_vm6, %vm599_vm9 }
 0x147   : > { %v779_v47 = vrot.slane %v777_v36, 7  ;;  %v871_v50 = vshrl.u32 %v3440_v41, 16  ;;  %v874_v51 = vshll.u32 %v3440_v41, 16  ;;  %v650_v52 = vsel %vm4387_vm5, %v570_v28, 0.0  ;;  %v1042_v53 = vld [vmem:[#allocation2 + $0x50] sm:$0x1] }
 0x148   : > { %v1025_v21 = vsel %vm4340_vm2, 0, %v1024_v23  ;;  %v938_v0 = vsel %vm4229_vm4, %v757_v31, %v937_v12  ;;  %v762_v56 = vrot.slane %v760_v44, 7  ;;  %v986_v58 = vld [vmem:[#allocation2 + $0x6c] sm:$0xf]  ;;  %v3438_v17 = vpack.c.bf16 %v650_v52, %v650_v52  ;;  %1636 = vrot.lane.b32.xlu0 %v3739_v46, %s3923_s15  ;;  %v979_v27 = vld [vmem:[#allocation2 + $0x60] sm:$0xf] }
 0x149   : > { %v1406_v37 = vld [vmem:[#allocation2 + $0xc] sm:$0xe]  ;;  %1026 = vst [vmem:[#allocation2 + $0x8] sm:$0x1] %v1025_v21  ;;  %v1043_v59 = vsel %vm4340_vm2, 0, %v1042_v53  ;;  %v782_v30 = vor.u32 %v780_v39, %v779_v47  ;;  %v784_v60 = vrot.slane %v779_v47, 4  ;;  %v543_v26 = vadd.f32 %v4156_v16, %v4241_v24 }
 0x14a   : > { %939 = vst [vmem:[#allocation2 + $0x18] sm:$0xf] %v938_v0  ;;  %v4407_v61 = vrot.slane %v871_v50, 7  ;;  %v3738_v62 = vld [vmem:[#allocation2 + $0x48] sm:$0xff]   ;;  %1044 = vst [vmem:[#allocation2 + $0x50] sm:$0x1] %v1043_v59  ;;  %v765_v63 = vor.u32 %v763_v45, %v762_v56  ;;  %v516_v44 = vadd.f32 %v4272_v54, %v4156_v16 }
 0x14b   : > { %v767_v18 = vrot.slane %v762_v56, 4  ;;  %v854_v40 = vshrl.u32 %v3438_v17, 16  ;;  %v857_v4 = vshll.u32 %v3438_v17, 16  ;;  %v783_v5 = vsel %vm4276_vm8, %v775_v10, %v782_v30  ;;  %1634 = vrot.lane.b32.xlu1 %v3738_v62, %s3923_s15  ;;  %v3740_v11 = vld [vmem:[#allocation2 + $0x48] sm:$0xff]   ;;  %v1002_v7 = vld [vmem:[#allocation2 + $0x24] sm:$0x1] }
 0x14c   : > { %v949_v1 = vsel %vm4263_vm7, %v784_v60, %v948_v43  ;;  %v876_v8 = vor.u32 %v874_v51, %v4407_v61  ;;  %v877_v20 = vrot.slane %v4407_v61, 4  ;;  %947 = vst.msk [vmem:[#allocation2 + $0x28] sm:$0xf] %vm917_vm10, %v783_v5  ;;  %v766_v12 = vsel %vm4276_vm8, %v758_v42, %v765_v63  ;;  %v1407_v22 = vld [vmem:[#allocation2 + $0x10] sm:$0xf]  ;;  %2156 = vrot.lane.b32.xlu0 %v3740_v11, %s3922_s16 }
 0x14d   : > { %950 = vst [vmem:[#allocation2 + $0x2c] sm:$0x1] %v949_v1  ;;  %v942_v10 = vsel %vm4263_vm7, %v767_v18, %v941_v48  ;;  %v4422_v13 = vrot.slane %v854_v40, 7  ;;  %v573_v14 = vmax.f32 %v4373_v6, 0.0  ;;  %v1003_v25 = vsel %vm4263_vm7, 0, %v1002_v7 }
 0x14e   : > { %940 = vst.msk [vmem:[#allocation2 + $0x1c] sm:$0xf] %vm917_vm10, %v766_v12  ;;  %943 = vst [vmem:[#allocation2 + $0x20] sm:$0x1] %v942_v10  ;;  %v987_v29 = vsel %vm4229_vm4, %v876_v8, %v986_v58  ;;  %v1408_v32 = vld [vmem:[#allocation2 + $0x14] sm:$0x1] }
 0x14f   : > { %v3277_v6 = vrot.slane %v1406_v37, 9  ;;  %v1930_v36 = vld [vmem:[#allocation2 + $0xc] sm:$0xe]  ;;  %1004 = vst [vmem:[#allocation2 + $0x24] sm:$0x1] %v1003_v25  ;;  %v859_v39 = vor.u32 %v857_v4, %v4422_v13  ;;  %v860_v41 = vrot.slane %v4422_v13, 4  ;;  %v508_v13 = vadd.f32 %v4156_v16, %v4283_v38 }
 0x150   : > { %988 = vst [vmem:[#allocation2 + $0x6c] sm:$0xf] %v987_v29  ;;  %v653_v28 = vsel %vm4365_vm11, %v573_v14, 0.0  ;;  %v1463_v24 = vrot.slane %v1407_v22, 5  ;;  %v571_v42 = vmax.f32 %v543_v26, 0.0  ;;  %v1466_v43 = vrot.slane %v1408_v32, 5 }
 0x151   : > { %v3441_v31 = vpack.c.bf16 %v653_v28, %v653_v28  ;;  %v1931_v45 = vld [vmem:[#allocation2 + $0x10] sm:$0xf]  ;;  %v4445_v46 = vld [vmem:[#allocation2 + $0x54] sm:$0xe]  ;;  %v999_v23 = vld [vmem:[#allocation2 + $0x18] sm:$0x1]  ;;  %v980_v47 = vsel %vm4229_vm4, %v859_v39, %v979_v27 }
 0x152   : > { %v1464_v2 = vsel %vm4434_vm12, %v3277_v6, %v1463_v24  ;;  %v1465_v48 = vrot.slane %v1463_v24, 4  ;;  %v1932_v50 = vld [vmem:[#allocation2 + $0x14] sm:$0x1]  ;;  %v3308_v51 = vrot.slane %v1930_v36, 9  ;;  %v1000_v52 = vsel %vm4263_vm7, 0, %v999_v23 }
 0x153   : > { %981 = vst [vmem:[#allocation2 + $0x60] sm:$0xf] %v980_v47  ;;  %v879_v21 = vshrl.u32 %v3441_v31, 16  ;;  %v882_v53 = vshll.u32 %v3441_v31, 16  ;;  %v651_v54 = vsel %vm4387_vm5, %v571_v42, 0.0  ;;  %vm588_vm14 = vcmp.ge.s32.totalorder %v4187_v35, 1 }
 0x154   : > { %vm598_vm15 = vcmp.le.s32.totalorder %v4187_v35, 16  ;;  %1001 = vst [vmem:[#allocation2 + $0x18] sm:$0x1] %v1000_v52  ;;  %v990_v56 = vld [vmem:[#allocation2 + $0x74] sm:$0x1]  ;;  %v3439_v58 = vpack.c.bf16 %v651_v54, %v651_v54  ;;  %v1467_v17 = vsel %vm4434_vm12, %v1465_v48, %v1466_v43  ;;  %v564_v19 = vmax.f32 %v516_v44, 0.0 }
 0x155   : > { %v1980_v37 = vrot.slane %v1931_v45, 5  ;;  %v1033_v59 = vld [vmem:[#allocation2 + $0x2c] sm:$0x1]  ;;  %v881_v30 = vrot.slane %v879_v21, 7  ;;  %v3285_v60 = vcombine.low %v1464_v2, %v1467_v17  ;;  %v1983_v34 = vrot.slane %v1932_v50, 5  ;;  %vm4514_vm1 = vmand %vm588_vm14, %vm598_vm15 }
 0x156   : > { %v3283_v62 = vrot.slane %v4445_v46, 9  ;;  %v1034_v63 = vsel %vm4340_vm2, 0, %v1033_v59  ;;  %v1030_v18 = vld [vmem:[#allocation2 + $0x20] sm:$0x1]  ;;  %v862_v40 = vshrl.u32 %v3439_v58, 16  ;;  %v865_v4 = vshll.u32 %v3439_v58, 16 }
 0x157   : > { %v644_v5 = vsel %vm4459_vm13, %v564_v19, 0.0  ;;  %1035 = vst [vmem:[#allocation2 + $0x2c] sm:$0x1] %v1034_v63  ;;  %v1031_v1 = vsel %vm4340_vm2, 0, %v1030_v18  ;;  %v1020_v8 = vld [vmem:[#allocation2 + $0x6c] sm:$0x1]  ;;  %v884_v27 = vor.u32 %v882_v53, %v881_v30  ;;  %1536 = vrot.lane.b32.xlu1 %v3285_v60, %s3924_s12  ;;  %v1981_v25 = vsel %vm4434_vm12, %v3308_v51, %v1980_v37 }
 0x158   : > { %v886_v11 = vrot.slane %v881_v30, 4  ;;  %v983_v7 = vld [vmem:[#allocation2 + $0x68] sm:$0x1]  ;;  %v3432_v12 = vpack.c.bf16 %v644_v5, %v644_v5  ;;  %v1425_v10 = vld [vmem:[#allocation2 + $0x58] sm:$0xf]  ;;  %v1021_v14 = vsel %vm4263_vm7, 0, %v1020_v8  ;;  %v511_v35 = vadd.f32 %v4156_v16, %v4300_v9 }
 0x159   : > { %1032 = vst [vmem:[#allocation2 + $0x20] sm:$0x1] %v1031_v1  ;;  %v864_v22 = vrot.slane %v862_v40, 7  ;;  %v1982_v29 = vrot.slane %v1980_v37, 4  ;;  %v1426_v26 = vld [vmem:[#allocation2 + $0x5c] sm:$0x1]  ;;  %v885_v32 = vsel %vm4276_vm8, %v877_v20, %v884_v27 }
 0x15a   : > { %1022 = vst [vmem:[#allocation2 + $0x6c] sm:$0x1] %v1021_v14  ;;  %v991_v6 = vsel %vm4263_vm7, %v886_v11, %v990_v56  ;;  %v803_v36 = vshrl.u32 %v3432_v12, 16  ;;  %v806_v39 = vshll.u32 %v3432_v12, 16  ;;  %v2469_v28 = vld [vmem:[#allocation2 + $0x54] sm:$0xe] }
 0x15b   : > { %v1017_v24 = vld [vmem:[#allocation2 + $0x60] sm:$0x1]  ;;  %989 = vst.msk [vmem:[#allocation2 + $0x70] sm:$0xf] %vm917_vm10, %v885_v32  ;;  %992 = vst [vmem:[#allocation2 + $0x74] sm:$0x1] %v991_v6  ;;  %v867_v31 = vor.u32 %v865_v4, %v864_v22  ;;  %v1984_v44 = vsel %vm4434_vm12, %v1982_v29, %v1983_v34 }
 0x15c   : > { %v869_v42 = vrot.slane %v864_v22, 4  ;;  %v958_v43 = vld [vmem:[#allocation2 + $0x3c] sm:$0xf]  ;;  %v1505_v61 = vrot.slane %v1425_v10, 5  ;;  %v2470_v45 = vld [vmem:[#allocation2 + $0x58] sm:$0xf]  ;;  %v3316_v23 = vcombine.low %v1981_v25, %v1984_v44 }
 0x15d   : > { %v1018_v20 = vsel %vm4263_vm7, 0, %v1017_v24  ;;  %v4490_v46 = vrot.slane %v803_v36, 7  ;;  %v1508_v47 = vrot.slane %v1426_v26, 5  ;;  %v2471_v2 = vld [vmem:[#allocation2 + $0x5c] sm:$0x1]  ;;  %v868_v50 = vsel %vm4276_vm8, %v860_v41, %v867_v31 }
 0x15e   : > { %v1403_v48 = vld [vmem:[#allocation2] sm:$0xe]  ;;  %1019 = vst [vmem:[#allocation2 + $0x60] sm:$0x1] %v1018_v20  ;;  %v984_v51 = vsel %vm4263_vm7, %v869_v42, %v983_v7  ;;  %v1506_v52 = vsel %vm4434_vm12, %v3283_v62, %v1505_v61  ;;  %v1507_v21 = vrot.slane %v1505_v61, 4  ;;  %2058 = vrot.lane.b32.xlu0 %v3316_v23, %s3925_s13  ;;  %v519_v41 = vadd.f32 %v4296_v3, %v4156_v16 }
 0x15f   : > { %v1404_v53 = vld [vmem:[#allocation2 + $0x4] sm:$0xf]  ;;  %v1405_v54 = vld [vmem:[#allocation2 + $0x8] sm:$0x1]  ;;  %982 = vst.msk [vmem:[#allocation2 + $0x64] sm:$0xf] %vm917_vm10, %v868_v50  ;;  %v808_v56 = vor.u32 %v806_v39, %v4490_v46 }
 0x160   : > { %985 = vst [vmem:[#allocation2 + $0x68] sm:$0x1] %v984_v51  ;;  %v809_v58 = vrot.slane %v4490_v46, 4  ;;  %v1509_v17 = vsel %vm4434_vm12, %v1507_v21, %v1508_v47  ;;  %v3345_v37 = vrot.slane %v2469_v28, 9  ;;  %v2539_v59 = vrot.slane %v2470_v45, 5 }
 0x161   : > { %v2542_v30 = vrot.slane %v2471_v2, 5  ;;  %v959_v38 = vsel %vm4229_vm4, %v808_v56, %v958_v43  ;;  %v3291_v60 = vcombine.low %v1506_v52, %v1509_v17  ;;  %v562_v34 = vmax.f32 %v508_v13, 0.0  ;;  %v2466_v40 = vld [vmem:[#allocation2 + $0x48] sm:$0xe]  ;;  %v2467_v9 = vld [vmem:[#allocation2 + $0x4c] sm:$0xf] }
 0x162   : > { %v565_v3 = vmax.f32 %v519_v41, 0.0  ;;  %960 = vst [vmem:[#allocation2 + $0x3c] sm:$0xf] %v959_v38  ;;  %v2540_v62 = vsel %vm4434_vm12, %v3345_v37, %v2539_v59  ;;  %v2541_v63 = vrot.slane %v2539_v59, 4  ;;  %v3276_v18 = vrot.slane %v1403_v48, 9 }
 0x163   : > { %v1051_v4 = vld [vmem:[#allocation2 + $0x74] sm:$0x1]  ;;  %1548 = vrot.lane.b32.xlu1 %v3291_v60, %s3924_s12  ;;  %v642_v5 = vsel %vm4514_vm1, %v562_v34, 0.0  ;;  %v1456_v8 = vrot.slane %v1404_v53, 5  ;;  %v1459_v27 = vrot.slane %v1405_v54, 5  ;;  %v563_v22 = vmax.f32 %v511_v35, 0.0 }
 0x164   : > { %v645_v1 = vsel %vm4459_vm13, %v565_v3, 0.0  ;;  %v1052_v11 = vsel %vm4340_vm2, 0, %v1051_v4  ;;  %v3430_v7 = vpack.c.bf16 %v642_v5, %v642_v5  ;;  %v2543_v16 = vsel %vm4434_vm12, %v2541_v63, %v2542_v30  ;;  %v4533_v10 = vld [vmem:[#allocation2 + $0x50] sm:$0x1]  ;;  %v1945_v29 = vld [vmem:[#allocation2 + $0x48] sm:$0xe] }
 0x165   : > { %v3433_v12 = vpack.c.bf16 %v645_v1, %v645_v1  ;;  %1053 = vst [vmem:[#allocation2 + $0x74] sm:$0x1] %v1052_v11  ;;  %v3353_v14 = vcombine.low %v2540_v62, %v2543_v16  ;;  %v1457_v0 = vsel %vm4434_vm12, %v3276_v18, %v1456_v8  ;;  %v1458_v25 = vrot.slane %v1456_v8, 4  ;;  %v1946_v26 = vld [vmem:[#allocation2 + $0x4c] sm:$0xf] }
 0x166   : > { %v786_v6 = vshrl.u32 %v3430_v7, 16  ;;  %v789_v36 = vshll.u32 %v3430_v7, 16  ;;  %v951_v31 = vld [vmem:[#allocation2 + $0x30] sm:$0xf]  ;;  %v643_v42 = vsel %vm4514_vm1, %v563_v22, 0.0  ;;  %v3344_v44 = vrot.slane %v2466_v40, 9 }
 0x167   : > { %v1048_v32 = vld [vmem:[#allocation2 + $0x68] sm:$0x1]  ;;  %v811_v39 = vshrl.u32 %v3433_v12, 16  ;;  %v814_v28 = vshll.u32 %v3433_v12, 16  ;;  %2592 = vrot.lane.b32.xlu0 %v3353_v14, %s3926_s18  ;;  %v1460_v43 = vsel %vm4434_vm12, %v1458_v25, %v1459_v27  ;;  %v962_v20 = vld [vmem:[#allocation2 + $0x44] sm:$0x1]  ;;  %v3431_v23 = vpack.c.bf16 %v643_v42, %v643_v42 }
 0x168   : > { %v1049_v24 = vsel %vm4340_vm2, 0, %v1048_v32  ;;  %v788_v61 = vrot.slane %v786_v6, 7  ;;  %v3284_v47 = vcombine.low %v1457_v0, %v1460_v43  ;;  %v1947_v2 = vld [vmem:[#allocation2 + $0x50] sm:$0x1]  ;;  %v2532_v50 = vrot.slane %v2467_v9, 5  ;;  %v3741_v43 = vld [vmem:[#allocation2 + $0x24] sm:$0xff]  }
 0x169   : > { %1050 = vst [vmem:[#allocation2 + $0x68] sm:$0x1] %v1049_v24  ;;  %v813_v45 = vrot.slane %v811_v39, 7  ;;  %v1008_v48 = vld [vmem:[#allocation2 + $0x3c] sm:$0x1]  ;;  %v2535_v51 = vrot.slane %v4533_v10, 5 }
 0x16a   : > { %v3313_v52 = vrot.slane %v1945_v29, 9  ;;  %v2015_v21 = vrot.slane %v1946_v26, 5  ;;  %v1421_v53 = vld [vmem:[#allocation2 + $0x48] sm:$0xe]  ;;  %v1009_v54 = vsel %vm4263_vm7, 0, %v1008_v48  ;;  %v791_v56 = vor.u32 %v789_v36, %v788_v61  ;;  %1534 = vrot.lane.b32.xlu1 %v3284_v47, %s3924_s12 }
 0x16b   : > { %v792_v13 = vrot.slane %v788_v61, 4  ;;  %v816_v41 = vor.u32 %v814_v28, %v813_v45  ;;  %v1422_v17 = vld [vmem:[#allocation2 + $0x4c] sm:$0xf]  ;;  %v1423_v19 = vld [vmem:[#allocation2 + $0x50] sm:$0x1]  ;;  %v818_v37 = vrot.slane %v813_v45, 4  ;;  %v2533_v38 = vsel %vm4434_vm12, %v3344_v44, %v2532_v50 }
 0x16c   : > { %1010 = vst [vmem:[#allocation2 + $0x3c] sm:$0x1] %v1009_v54  ;;  %v794_v59 = vshrl.u32 %v3431_v23, 16  ;;  %v797_v30 = vshll.u32 %v3431_v23, 16  ;;  %v1130_v60 = vld [vmem:[#allocation2 + $0xc] sm:$0xf]  ;;  %v952_v34 = vsel %vm4229_vm4, %v791_v56, %v951_v31  ;;  %v2016_v35 = vsel %vm4434_vm12, %v3313_v52, %v2015_v21 }
 0x16d   : > { %v817_v3 = vsel %vm4276_vm8, %v809_v58, %v816_v41  ;;  %v955_v62 = vld [vmem:[#allocation2 + $0x38] sm:$0x1]  ;;  %v2534_v63 = vrot.slane %v2532_v50, 4  ;;  %v1131_v18 = vld [vmem:[#allocation2 + $0x10] sm:$0xf]  ;;  %v963_v15 = vsel %vm4263_vm7, %v818_v37, %v962_v20  ;;  %v2017_v4 = vrot.slane %v2015_v21, 4 }
 0x16e   : > { %vm1151_vm11 = vsmask.f32 3328  ;;  %vm1152_vm0 = vsmask.f32 7440  ;;  %953 = vst [vmem:[#allocation2 + $0x30] sm:$0xf] %v952_v34 }
 0x16f   : > { %961 = vst.msk [vmem:[#allocation2 + $0x40] sm:$0xf] %vm917_vm10, %v817_v3  ;;  %v796_v40 = vrot.slane %v794_v59, 7  ;;  %v2018_v46 = vrot.slane %v1947_v2, 5  ;;  %964 = vst [vmem:[#allocation2 + $0x44] sm:$0x1] %v963_v15  ;;  %v2536_v58 = vsel %vm4434_vm12, %v2534_v63, %v2535_v51 }
 0x170   : > { %v3282_v5 = vrot.slane %v1421_v53, 9  ;;  %v1498_v1 = vrot.slane %v1422_v17, 5  ;;  %v1501_v8 = vrot.slane %v1423_v19, 5  ;;  %v3352_v7 = vcombine.low %v2533_v38, %v2536_v58  ;;  %v1132_v16 = vld [vmem:[#allocation2 + $0x14] sm:$0x1]  ;;  %v3742_v19 = vld [vmem:[#allocation2 + $0x24] sm:$0xff]  }
 0x171   : > { %v799_v27 = vor.u32 %v797_v30, %v796_v40  ;;  %v801_v11 = vrot.slane %v796_v40, 4  ;;  %v2019_v12 = vsel %vm4434_vm12, %v2017_v4, %v2018_v46  ;;  %v1179_v22 = vshrl.u32 %v1130_v60, 16  ;;  %v2196_v0 = vld [vmem:[#allocation2 + $0x54] sm:$0xf]  ;;  %v2197_v6 = vld [vmem:[#allocation2 + $0x58] sm:$0xf] }
 0x172   : > { %v3321_v9 = vcombine.low %v2016_v35, %v2019_v12  ;;  %v1499_v10 = vsel %vm4434_vm12, %v3282_v5, %v1498_v1  ;;  %v1500_v14 = vrot.slane %v1498_v1, 4  ;;  %2590 = vrot.lane.b32.xlu0 %v3352_v7, %s3926_s18  ;;  %v1182_v26 = vshll.u32 %v1130_v60, 16  ;;  %v2198_v24 = vld [vmem:[#allocation2 + $0x5c] sm:$0x1]  ;;  %v1657_v31 = vld [vmem:[#allocation2 + $0xc] sm:$0xf] }
 0x173   : > { %v800_v25 = vsel %vm4276_vm8, %v792_v13, %v799_v27  ;;  %v956_v29 = vsel %vm4263_vm7, %v801_v11, %v955_v62  ;;  %v1188_v32 = vshll.u32 %v1131_v18, 16  ;;  %v1181_v39 = vrot.slane %v1179_v22, 4  ;;  %v1658_v20 = vld [vmem:[#allocation2 + $0x10] sm:$0xf]  ;;  %v3743_v60 = vld [vmem:[#allocation2 + $0x18] sm:$0xff]  }
 0x174   : > { %954 = vst.msk [vmem:[#allocation2 + $0x34] sm:$0xf] %vm917_vm10, %v800_v25  ;;  %957 = vst [vmem:[#allocation2 + $0x38] sm:$0x1] %v956_v29  ;;  %2068 = vrot.lane.b32.xlu1 %v3321_v9, %s3925_s13  ;;  %v1502_v36 = vsel %vm4434_vm12, %v1500_v14, %v1501_v8  ;;  %v1192_v28 = vshrl.u32 %v1131_v18, 16  ;;  %v1198_v55 = vshll.u32 %v1132_v16, 16 }
 0x175   : > { %v3290_v42 = vcombine.low %v1499_v10, %v1502_v36  ;;  %v1184_v44 = vrot.slane %v1182_v26, 5  ;;  %v1190_v61 = vrot.slane %v1188_v32, 5  ;;  %v2326_v45 = vshrl.u32 %v2196_v0, 16  ;;  %v1005_v23 = vld [vmem:[#allocation2 + $0x30] sm:$0x1]  ;;  %vm4584_vm10 = vmor %vm1151_vm11, %vm1152_vm0 }
 0x176   : > { %v1194_v47 = vrot.slane %v1192_v28, 4  ;;  %v1200_v2 = vrot.slane %v1198_v55, 5  ;;  %v2329_v48 = vshll.u32 %v2196_v0, 16  ;;  %v2335_v50 = vshll.u32 %v2197_v6, 16  ;;  %v1039_v52 = vld [vmem:[#allocation2 + $0x44] sm:$0x1] }
 0x177   : > { %v1006_v51 = vsel %vm4263_vm7, 0, %v1005_v23  ;;  %1546 = vrot.lane.b32.xlu0 %v3290_v42, %s3924_s12  ;;  %v1185_v21 = vor.u32 %v1184_v44, %v1181_v39  ;;  %v2328_v53 = vrot.slane %v2326_v45, 4  ;;  %v2339_v54 = vshrl.u32 %v2197_v6, 16  ;;  %v1659_v62 = vld [vmem:[#allocation2 + $0x14] sm:$0x1] }
 0x178   : > { %1007 = vst [vmem:[#allocation2 + $0x30] sm:$0x1] %v1006_v51  ;;  %v1040_v56 = vsel %vm4340_vm2, 0, %v1039_v52  ;;  %2150 = vrot.lane.b32.xlu1 %v3741_v43, %s3922_s16  ;;  %v1195_v13 = vor.u32 %v1194_v47, %v1190_v61  ;;  %v2331_v41 = vrot.slane %v2329_v48, 5  ;;  %v2337_v17 = vrot.slane %v2335_v50, 5 }
 0x179   : > { %1041 = vst [vmem:[#allocation2 + $0x44] sm:$0x1] %v1040_v56  ;;  %v1186_v37 = vrot.slane %v1185_v21, 4  ;;  %v2341_v59 = vrot.slane %v2339_v54, 4  ;;  %v2345_v30 = vshll.u32 %v2198_v24, 16  ;;  %v1682_v38 = vshrl.u32 %v1657_v31, 16 }
 0x17a   : > { %v1196_v34 = vrot.slane %v1195_v13, 4  ;;  %v2332_v3 = vor.u32 %v2331_v41, %v2328_v53  ;;  %v1685_v63 = vshll.u32 %v1657_v31, 16  ;;  %v1691_v35 = vshll.u32 %v1658_v20, 16  ;;  %v1148_v58 = vld [vmem:[#allocation2 + $0x54] sm:$0xf] }
 0x17b   : > { %v1036_v18 = vld [vmem:[#allocation2 + $0x38] sm:$0x1]  ;;  %1628 = vrot.lane.b32.xlu0 %v3742_v19, %s3923_s15  ;;  %v1191_v15 = vsel %vm4584_vm10, %v1186_v37, %v1190_v61  ;;  %v2342_v40 = vor.u32 %v2341_v59, %v2337_v17  ;;  %v2347_v4 = vrot.slane %v2345_v30, 5  ;;  %v1684_v46 = vrot.slane %v1682_v38, 4  ;;  %v1150_v57 = vld [vmem:[#allocation2 + $0x5c] sm:$0x1] }
 0x17c   : > { %v1037_v5 = vsel %vm4340_vm2, 0, %v1036_v18  ;;  %1626 = vrot.lane.b32.xlu1 %v3743_v60, %s3923_s15  ;;  %v1201_v1 = vsel %vm4584_vm10, %v1196_v34, %v1200_v2  ;;  %v2333_v8 = vrot.slane %v2332_v3, 4  ;;  %v1687_v27 = vrot.slane %v1685_v63, 5  ;;  %v1149_v11 = vld [vmem:[#allocation2 + $0x58] sm:$0xf] }
 0x17d   : > { %1038 = vst [vmem:[#allocation2 + $0x38] sm:$0x1] %v1037_v5  ;;  %v3269_v7 = vcombine.low %v1191_v15, %v1201_v1  ;;  %v2343_v12 = vrot.slane %v2342_v40, 4  ;;  %v1693_v16 = vrot.slane %v1691_v35, 5  ;;  %v1695_v9 = vshrl.u32 %v1658_v20, 16 }
 0x17e   : > { %v2338_v10 = vsel %vm4584_vm10, %v2333_v8, %v2337_v17  ;;  %v1688_v14 = vor.u32 %v1687_v27, %v1684_v46  ;;  %v1701_v22 = vshll.u32 %v1659_v62, 16  ;;  %v1323_v0 = vshrl.u32 %v1148_v58, 16  ;;  %v1672_v6 = vld [vmem:[#allocation2 + $0x48] sm:$0xf]  ;;  %v1673_v24 = vld [vmem:[#allocation2 + $0x4c] sm:$0xf] }
 0x17f   : > { %1372 = vrot.lane.b32.xlu0 %v3269_v7, %s3927_s27  ;;  %v2348_v25 = vsel %vm4584_vm10, %v2343_v12, %v2347_v4  ;;  %v1697_v29 = vrot.slane %v1695_v9, 4  ;;  %v1326_v26 = vshll.u32 %v1148_v58, 16  ;;  %v1332_v32 = vshll.u32 %v1149_v11, 16  ;;  %v1674_v50 = vld [vmem:[#allocation2 + $0x50] sm:$0x1]  ;;  %v3744_v7 = vld [vmem:[#allocation2 + $0x18] sm:$0xff]  }
 0x180   : > { %v3337_v36 = vcombine.low %v2338_v10, %v2348_v25  ;;  %v1689_v39 = vrot.slane %v1688_v14, 4  ;;  %v1703_v28 = vrot.slane %v1701_v22, 5  ;;  %v1325_v55 = vrot.slane %v1323_v0, 4  ;;  %v1127_v56 = vld [vmem:[#allocation2] sm:$0xf] }
 0x181   : > { %v1698_v31 = vor.u32 %v1697_v29, %v1693_v16  ;;  %v1328_v42 = vrot.slane %v1326_v26, 5  ;;  %v1334_v43 = vrot.slane %v1332_v32, 5  ;;  %v1336_v44 = vshrl.u32 %v1149_v11, 16  ;;  %v1128_v37 = vld [vmem:[#allocation2 + $0x4] sm:$0xf] }
 0x182   : > { %2431 = vrot.lane.b32.xlu1 %v3337_v36, %s3928_s21  ;;  %v1694_v61 = vsel %vm4584_vm10, %v1689_v39, %v1693_v16  ;;  %v1342_v45 = vshll.u32 %v1150_v57, 16  ;;  %v1802_v20 = vshrl.u32 %v1672_v6, 16  ;;  %v1805_v23 = vshll.u32 %v1672_v6, 16  ;;  %v1129_v34 = vld [vmem:[#allocation2 + $0x8] sm:$0x1]  ;;  %v3745_v36 = vld [vmem:[#allocation2 + $0x60] sm:$0xff]  }
 0x183   : > { %v1699_v47 = vrot.slane %v1698_v31, 4  ;;  %v1329_v2 = vor.u32 %v1328_v42, %v1325_v55  ;;  %v1338_v48 = vrot.slane %v1336_v44, 4  ;;  %v1811_v51 = vshll.u32 %v1673_v24, 16  ;;  %v1145_v46 = vld [vmem:[#allocation2 + $0x48] sm:$0xf] }
 0x184   : > { %v1344_v52 = vrot.slane %v1342_v45, 5  ;;  %v1804_v21 = vrot.slane %v1802_v20, 4  ;;  %v1807_v53 = vrot.slane %v1805_v23, 5  ;;  %v1815_v54 = vshrl.u32 %v1673_v24, 16  ;;  %v1146_v27 = vld [vmem:[#allocation2 + $0x4c] sm:$0xf] }
 0x185   : > { %v1704_v13 = vsel %vm4584_vm10, %v1699_v47, %v1703_v28  ;;  %v1330_v41 = vrot.slane %v1329_v2, 4  ;;  %v1339_v17 = vor.u32 %v1338_v48, %v1334_v43  ;;  %v1813_v19 = vrot.slane %v1811_v51, 5  ;;  %v1147_v57 = vld [vmem:[#allocation2 + $0x50] sm:$0x1]  ;;  %v2193_v6 = vld [vmem:[#allocation2 + $0x48] sm:$0xf] }
 0x186   : > { %v3300_v59 = vcombine.low %v1694_v61, %v1704_v13  ;;  %v1808_v30 = vor.u32 %v1807_v53, %v1804_v21  ;;  %v1817_v38 = vrot.slane %v1815_v54, 4  ;;  %v1821_v60 = vshll.u32 %v1674_v50, 16  ;;  %v2194_v31 = vld [vmem:[#allocation2 + $0x4c] sm:$0xf]  ;;  %v2195_v45 = vld [vmem:[#allocation2 + $0x50] sm:$0x1] }
 0x187   : > { %v1335_v3 = vsel %vm4584_vm10, %v1330_v41, %v1334_v43  ;;  %v1340_v62 = vrot.slane %v1339_v17, 4  ;;  %v1155_v63 = vshrl.u32 %v1127_v56, 16  ;;  %v1158_v35 = vshll.u32 %v1127_v56, 16  ;;  %v1412_v48 = vld [vmem:[#allocation2 + $0x24] sm:$0xe] }
 0x188   : > { %1897 = vrot.lane.b32.xlu0 %v3300_v59, %s3929_s19  ;;  %v1809_v18 = vrot.slane %v1808_v30, 4  ;;  %v1818_v15 = vor.u32 %v1817_v38, %v1813_v19  ;;  %v1823_v40 = vrot.slane %v1821_v60, 5  ;;  %v1164_v4 = vshll.u32 %v1128_v37, 16  ;;  %v1413_v53 = vld [vmem:[#allocation2 + $0x28] sm:$0xf] }
 0x189   : > { %v1345_v58 = vsel %vm4584_vm10, %v1340_v62, %v1344_v52  ;;  %v1157_v5 = vrot.slane %v1155_v63, 4  ;;  %v1160_v1 = vrot.slane %v1158_v35, 5  ;;  %v1168_v8 = vshrl.u32 %v1128_v37, 16  ;;  %v1414_v54 = vld [vmem:[#allocation2 + $0x2c] sm:$0x1] }
 0x18a   : > { %v3275_v11 = vcombine.low %v1335_v3, %v1345_v58  ;;  %v1814_v12 = vsel %vm4584_vm10, %v1809_v18, %v1813_v19  ;;  %v1819_v16 = vrot.slane %v1818_v15, 4  ;;  %v1166_v9 = vrot.slane %v1164_v4, 5  ;;  %v2457_v19 = vld [vmem:[#allocation2 + $0x24] sm:$0xe]  ;;  %v2458_v60 = vld [vmem:[#allocation2 + $0x28] sm:$0xf] }
 0x18b   : > { %v1161_v10 = vor.u32 %v1160_v1, %v1157_v5  ;;  %v1170_v14 = vrot.slane %v1168_v8, 4  ;;  %v1174_v22 = vshll.u32 %v1129_v34, 16  ;;  %v1299_v0 = vshrl.u32 %v1145_v46, 16  ;;  %v2459_v34 = vld [vmem:[#allocation2 + $0x2c] sm:$0x1] }
 0x18c   : > { %1384 = vrot.lane.b32.xlu1 %v3275_v11, %s3927_s27  ;;  %2148 = vrot.lane.b32.xlu0 %v3744_v7, %s3922_s16  ;;  %v1824_v25 = vsel %vm4584_vm10, %v1819_v16, %v1823_v40  ;;  %v1302_v29 = vshll.u32 %v1145_v46, 16  ;;  %v1308_v26 = vshll.u32 %v1146_v27, 16  ;;  %v1312_v32 = vshrl.u32 %v1146_v27, 16  ;;  %v1933_v3 = vld [vmem:[#allocation2 + $0x18] sm:$0xe] }
 0x18d   : > { %v3305_v39 = vcombine.low %v1814_v12, %v1824_v25  ;;  %v1162_v28 = vrot.slane %v1161_v10, 4  ;;  %v1171_v55 = vor.u32 %v1170_v14, %v1166_v9  ;;  %v1176_v24 = vrot.slane %v1174_v22, 5  ;;  %v1934_v58 = vld [vmem:[#allocation2 + $0x1c] sm:$0xf]  ;;  %v1935_v11 = vld [vmem:[#allocation2 + $0x20] sm:$0x1] }
 0x18e   : > { %v1301_v42 = vrot.slane %v1299_v0, 4  ;;  %v1304_v43 = vrot.slane %v1302_v29, 5  ;;  %v1310_v44 = vrot.slane %v1308_v26, 5  ;;  %v1314_v61 = vrot.slane %v1312_v32, 4  ;;  %v1936_v7 = vld [vmem:[#allocation2 + $0x24] sm:$0xe] }
 0x18f   : > { %v1167_v20 = vsel %vm4584_vm10, %v1162_v28, %v1166_v9  ;;  %v1172_v23 = vrot.slane %v1171_v55, 4  ;;  %v1318_v47 = vshll.u32 %v1147_v57, 16  ;;  %v2302_v2 = vshrl.u32 %v2193_v6, 16  ;;  %v1937_v14 = vld [vmem:[#allocation2 + $0x28] sm:$0xf] }
 0x190   : > { %1638 = vrot.lane.b32.xlu1 %v3745_v36, %s3923_s15  ;;  %v1305_v50 = vor.u32 %v1304_v43, %v1301_v42  ;;  %v1315_v51 = vor.u32 %v1314_v61, %v1310_v44  ;;  %v2305_v52 = vshll.u32 %v2193_v6, 16  ;;  %v2311_v21 = vshll.u32 %v2194_v31, 16  ;;  %v1938_v22 = vld [vmem:[#allocation2 + $0x2c] sm:$0x1]  ;;  %v2454_v26 = vld [vmem:[#allocation2 + $0x18] sm:$0xe] }
 0x191   : > { %v1177_v56 = vsel %vm4584_vm10, %v1172_v23, %v1176_v24  ;;  %v1320_v13 = vrot.slane %v1318_v47, 5  ;;  %v2304_v41 = vrot.slane %v2302_v2, 4  ;;  %v2315_v17 = vshrl.u32 %v2194_v31, 16  ;;  %v2455_v28 = vld [vmem:[#allocation2 + $0x1c] sm:$0xf] }
 0x192   : > { %v3268_v37 = vcombine.low %v1167_v20, %v1177_v56  ;;  %v1306_v59 = vrot.slane %v1305_v50, 4  ;;  %v1316_v30 = vrot.slane %v1315_v51, 4  ;;  %v2307_v38 = vrot.slane %v2305_v52, 5  ;;  %v2456_v43 = vld [vmem:[#allocation2 + $0x20] sm:$0x1] }
 0x193   : > { %v2313_v62 = vrot.slane %v2311_v21, 5  ;;  %v2317_v63 = vrot.slane %v2315_v17, 4  ;;  %v2321_v35 = vshll.u32 %v2195_v45, 16  ;;  %v3279_v18 = vrot.slane %v1412_v48, 9  ;;  %v2184_v23 = vld [vmem:[#allocation2 + $0x24] sm:$0xf] }
 0x194   : > { %1907 = vrot.lane.b32.xlu1 %v3305_v39, %s3929_s19  ;;  %1370 = vrot.lane.b32.xlu0 %v3268_v37, %s3927_s27  ;;  %v1311_v15 = vsel %vm4584_vm10, %v1306_v59, %v1310_v44  ;;  %v1321_v40 = vsel %vm4584_vm10, %v1316_v30, %v1320_v13  ;;  %v2308_v4 = vor.u32 %v2307_v38, %v2304_v41  ;;  %v1477_v46 = vrot.slane %v1413_v53, 5  ;;  %v2185_v51 = vld [vmem:[#allocation2 + $0x28] sm:$0xf]  ;;  %v2186_v56 = vld [vmem:[#allocation2 + $0x2c] sm:$0x1] }
 0x195   : > { %v3274_v5 = vcombine.low %v1311_v15, %v1321_v40  ;;  %v2318_v1 = vor.u32 %v2317_v63, %v2313_v62  ;;  %v2323_v8 = vrot.slane %v2321_v35, 5  ;;  %v1480_v27 = vrot.slane %v1414_v54, 5  ;;  %v1409_v37 = vld [vmem:[#allocation2 + $0x18] sm:$0xe]  ;;  %v1410_v59 = vld [vmem:[#allocation2 + $0x1c] sm:$0xf] }
 0x196   : > { %v2309_v12 = vrot.slane %v2308_v4, 4  ;;  %v1478_v16 = vsel %vm4434_vm12, %v3279_v18, %v1477_v46  ;;  %v1479_v9 = vrot.slane %v1477_v46, 4  ;;  %v3341_v10 = vrot.slane %v2457_v19, 9  ;;  %v1136_v15 = vld [vmem:[#allocation2 + $0x24] sm:$0xf] }
 0x197   : > { %v2319_v57 = vrot.slane %v2318_v1, 4  ;;  %v2511_v0 = vrot.slane %v2458_v60, 5  ;;  %v2514_v25 = vrot.slane %v2459_v34, 5  ;;  %v3309_v29 = vrot.slane %v1933_v3, 9  ;;  %v1411_v3 = vld [vmem:[#allocation2 + $0x20] sm:$0x1] }
 0x198   : > { %1382 = vrot.lane.b32.xlu1 %v3274_v5, %s3927_s27  ;;  %v2314_v32 = vsel %vm4584_vm10, %v2309_v12, %v2313_v62  ;;  %v1481_v6 = vsel %vm4434_vm12, %v1479_v9, %v1480_v27  ;;  %v1987_v36 = vrot.slane %v1934_v58, 5  ;;  %v1990_v39 = vrot.slane %v1935_v11, 5  ;;  %v1137_v5 = vld [vmem:[#allocation2 + $0x28] sm:$0xf]  ;;  %v3746_v1 = vld [vmem:[#allocation2 + $0x3c] sm:$0xff]  }
 0x199   : > { %v2324_v55 = vsel %vm4584_vm10, %v2319_v57, %v2323_v8  ;;  %v3287_v24 = vcombine.low %v1478_v16, %v1481_v6  ;;  %v2512_v31 = vsel %vm4434_vm12, %v3341_v10, %v2511_v0  ;;  %v2513_v42 = vrot.slane %v2511_v0, 4  ;;  %v1138_v10 = vld [vmem:[#allocation2 + $0x2c] sm:$0x1] }
 0x19a   : > { %v3336_v44 = vcombine.low %v2314_v32, %v2324_v55  ;;  %v1988_v61 = vsel %vm4434_vm12, %v3309_v29, %v1987_v36  ;;  %v1989_v45 = vrot.slane %v1987_v36, 4  ;;  %v3310_v20 = vrot.slane %v1936_v7, 9 }
 0x19b   : > { %v2515_v47 = vsel %vm4434_vm12, %v2513_v42, %v2514_v25  ;;  %v1994_v2 = vrot.slane %v1937_v14, 5  ;;  %v1997_v48 = vrot.slane %v1938_v22, 5  ;;  %v3340_v50 = vrot.slane %v2454_v26, 9  ;;  %v3757_v22 = vld [vmem:[%s5111_s3] sm:$0xff]  }
 0x19c   : > { %2429 = vrot.lane.b32.xlu0 %v3336_v44, %s3928_s21  ;;  %1540 = vrot.lane.b32.xlu1 %v3287_v24, %s3924_s12  ;;  %v3349_v52 = vcombine.low %v2512_v31, %v2515_v47  ;;  %v1991_v21 = vsel %vm4434_vm12, %v1989_v45, %v1990_v39  ;;  %v2504_v53 = vrot.slane %v2455_v28, 5  ;;  %v2507_v54 = vrot.slane %v2456_v43, 5  ;;  %v1663_v26 = vld [vmem:[#allocation2 + $0x24] sm:$0xf] }
 0x19d   : > { %v3317_v13 = vcombine.low %v1988_v61, %v1991_v21  ;;  %v1995_v41 = vsel %vm4434_vm12, %v3310_v20, %v1994_v2  ;;  %v1996_v17 = vrot.slane %v1994_v2, 4  ;;  %v2230_v19 = vshrl.u32 %v2184_v23, 16  ;;  %3558 = vmatprep.subr.bf16.mxu1 %v3757_v22  ;;  %v1664_v61 = vld [vmem:[#allocation2 + $0x28] sm:$0xf] }
 0x19e   : > { %v2505_v30 = vsel %vm4434_vm12, %v3340_v50, %v2504_v53  ;;  %v2506_v38 = vrot.slane %v2504_v53, 4  ;;  %v2233_v60 = vshll.u32 %v2184_v23, 16  ;;  %v2239_v34 = vshll.u32 %v2185_v51, 16  ;;  %3559 = vmatpush3.bf16.msra.mxu1 %v3757_v22  ;;  %v1660_v50 = vld [vmem:[#allocation2 + $0x18] sm:$0xf] }
 0x19f   : > { %v1998_v62 = vsel %vm4434_vm12, %v1996_v17, %v1997_v48  ;;  %v2232_v63 = vrot.slane %v2230_v19, 4  ;;  %v2243_v35 = vshrl.u32 %v2185_v51, 16  ;;  %v2249_v18 = vshll.u32 %v2186_v56, 16  ;;  %v1665_v48 = vld [vmem:[#allocation2 + $0x2c] sm:$0x1] }
 0x1a0   : > { %2584 = vrot.lane.b32.xlu0 %v3349_v52, %s3926_s18  ;;  %2060 = vrot.lane.b32.xlu1 %v3317_v13, %s3925_s13  ;;  %v3318_v40 = vcombine.low %v1995_v41, %v1998_v62  ;;  %v2508_v4 = vsel %vm4434_vm12, %v2506_v38, %v2507_v54  ;;  %v2235_v46 = vrot.slane %v2233_v60, 5  ;;  %v2241_v58 = vrot.slane %v2239_v34, 5  ;;  %v3758_v54 = vld [vmem:[%s5111_s3 + $0x8] sm:$0xff]  }
 0x1a1   : > { %v3348_v8 = vcombine.low %v2505_v30, %v2508_v4  ;;  %v2245_v27 = vrot.slane %v2243_v35, 4  ;;  %v2251_v11 = vrot.slane %v2249_v18, 5  ;;  %v3278_v7 = vrot.slane %v1409_v37, 9  ;;  %3560 = vmatprep.subr.bf16.mxu1 %v3758_v54  ;;  %v1133_v35 = vld [vmem:[#allocation2 + $0x18] sm:$0xf] }
 0x1a2   : > { %v2236_v12 = vor.u32 %v2235_v46, %v2232_v63  ;;  %v1470_v16 = vrot.slane %v1410_v59, 5  ;;  %v1473_v9 = vrot.slane %v1411_v3, 5  ;;  %v1227_v14 = vshrl.u32 %v1136_v15, 16  ;;  %v1661_v59 = vld [vmem:[#allocation2 + $0x1c] sm:$0xf]  ;;  %3561 = vmatpush3.bf16.msra.mxu1 %v3758_v54 }
 0x1a3   : > { %v2246_v57 = vor.u32 %v2245_v27, %v2241_v58  ;;  %v1230_v0 = vshll.u32 %v1136_v15, 16  ;;  %v1236_v25 = vshll.u32 %v1137_v5, 16  ;;  %v1240_v29 = vshrl.u32 %v1137_v5, 16  ;;  %v1662_v63 = vld [vmem:[#allocation2 + $0x20] sm:$0x1] }
 0x1a4   : > { %2062 = vrot.lane.b32.xlu0 %v3318_v40, %s3925_s13  ;;  %2154 = vrot.lane.b32.xlu1 %v3746_v1, %s3922_s16  ;;  %v2237_v32 = vrot.slane %v2236_v12, 4  ;;  %v1471_v6 = vsel %vm4434_vm12, %v3278_v7, %v1470_v16  ;;  %v1472_v36 = vrot.slane %v1470_v16, 4  ;;  %v1229_v39 = vrot.slane %v1227_v14, 4  ;;  %v3747_v46 = vld [vmem:[#allocation2 + $0x3c] sm:$0xff]  }
 0x1a5   : > { %v2247_v28 = vrot.slane %v2246_v57, 4  ;;  %v1232_v55 = vrot.slane %v1230_v0, 5  ;;  %v1238_v24 = vrot.slane %v1236_v25, 5  ;;  %v1242_v31 = vrot.slane %v1240_v29, 4  ;;  %v1134_v7 = vld [vmem:[#allocation2 + $0x1c] sm:$0xf] }
 0x1a6   : > { %v2242_v42 = vsel %vm4584_vm10, %v2237_v32, %v2241_v58  ;;  %v1474_v43 = vsel %vm4434_vm12, %v1472_v36, %v1473_v9  ;;  %v1246_v44 = vshll.u32 %v1138_v10, 16  ;;  %v1730_v45 = vshrl.u32 %v1663_v26, 16  ;;  %v1135_v57 = vld [vmem:[#allocation2 + $0x20] sm:$0x1]  ;;  %v3759_v0 = vld [vmem:[%s5111_s3 + $0x10] sm:$0xff]  }
 0x1a7   : > { %v2252_v20 = vsel %vm4584_vm10, %v2247_v28, %v2251_v11  ;;  %v3286_v23 = vcombine.low %v1471_v6, %v1474_v43  ;;  %v1233_v47 = vor.u32 %v1232_v55, %v1229_v39  ;;  %v1243_v2 = vor.u32 %v1242_v31, %v1238_v24  ;;  %v3748_v25 = vld [vmem:[#allocation2 + $0x30] sm:$0xff]   ;;  %v2181_v36 = vld [vmem:[#allocation2 + $0x18] sm:$0xf]  ;;  %3562 = vmatprep.subr.bf16.mxu1 %v3759_v0 }
 0x1a8   : > { %2582 = vrot.lane.b32.xlu0 %v3348_v8, %s3926_s18  ;;  %v3333_v51 = vcombine.low %v2242_v42, %v2252_v20  ;;  %v1248_v52 = vrot.slane %v1246_v44, 5  ;;  %v1732_v21 = vrot.slane %v1730_v45, 4  ;;  %v1733_v53 = vshll.u32 %v1663_v26, 16  ;;  %v2183_v45 = vld [vmem:[#allocation2 + $0x20] sm:$0x1]  ;;  %3563 = vmatpush3.bf16.msra.mxu1 %v3759_v0 }
 0x1a9   : > { %v1234_v56 = vrot.slane %v1233_v47, 4  ;;  %v1244_v13 = vrot.slane %v1243_v2, 4  ;;  %v1739_v41 = vshll.u32 %v1664_v61, 16  ;;  %v1743_v17 = vshrl.u32 %v1664_v61, 16  ;;  %v2182_v61 = vld [vmem:[#allocation2 + $0x1c] sm:$0xf] }
 0x1aa   : > { %2423 = vrot.lane.b32.xlu1 %v3333_v51, %s3928_s21  ;;  %v1735_v19 = vrot.slane %v1733_v53, 5  ;;  %v1749_v37 = vshll.u32 %v1665_v48, 16  ;;  %v1706_v30 = vshrl.u32 %v1660_v50, 16  ;;  %v1709_v38 = vshll.u32 %v1660_v50, 16  ;;  %v1418_v48 = vld [vmem:[#allocation2 + $0x3c] sm:$0xe] }
 0x1ab   : > { %v1239_v60 = vsel %vm4584_vm10, %v1234_v56, %v1238_v24  ;;  %v1249_v34 = vsel %vm4584_vm10, %v1244_v13, %v1248_v52  ;;  %v1741_v3 = vrot.slane %v1739_v41, 5  ;;  %v1745_v62 = vrot.slane %v1743_v17, 4  ;;  %v1419_v53 = vld [vmem:[#allocation2 + $0x40] sm:$0xf]  ;;  %v1420_v17 = vld [vmem:[#allocation2 + $0x44] sm:$0x1] }
 0x1ac   : > { %1538 = vrot.lane.b32.xlu0 %v3286_v23, %s3924_s12  ;;  %v3271_v18 = vcombine.low %v1239_v60, %v1249_v34  ;;  %v1736_v15 = vor.u32 %v1735_v19, %v1732_v21  ;;  %v1751_v40 = vrot.slane %v1749_v37, 5  ;;  %v1708_v4 = vrot.slane %v1706_v30, 4  ;;  %v3761_v19 = vld [vmem:[%s5111_s3 + $0x18] sm:$0xff]  }
 0x1ad   : > { %v1746_v58 = vor.u32 %v1745_v62, %v1741_v3  ;;  %v1711_v5 = vrot.slane %v1709_v38, 5  ;;  %v1715_v1 = vshll.u32 %v1661_v59, 16  ;;  %v1719_v8 = vshrl.u32 %v1661_v59, 16  ;;  %v3749_v59 = vld [vmem:[#allocation2 + $0x30] sm:$0xff]   ;;  %v2463_v34 = vld [vmem:[#allocation2 + $0x3c] sm:$0xe]  ;;  %3564 = vmatprep.subr.bf16.mxu1 %v3761_v19 }
 0x1ae   : > { %1376 = vrot.lane.b32.xlu1 %v3271_v18, %s3927_s27  ;;  %v1737_v27 = vrot.slane %v1736_v15, 4  ;;  %v1725_v11 = vshll.u32 %v1662_v63, 16  ;;  %v1203_v12 = vshrl.u32 %v1133_v35, 16  ;;  %v1206_v16 = vshll.u32 %v1133_v35, 16  ;;  %3565 = vmatpush3.bf16.msra.mxu1 %v3761_v19 }
 0x1af   : > { %v1747_v9 = vrot.slane %v1746_v58, 4  ;;  %v1712_v10 = vor.u32 %v1711_v5, %v1708_v4  ;;  %v1717_v14 = vrot.slane %v1715_v1, 5  ;;  %v1721_v22 = vrot.slane %v1719_v8, 4  ;;  %v2465_v58 = vld [vmem:[#allocation2 + $0x44] sm:$0x1] }
 0x1b0   : > { %1632 = vrot.lane.b32.xlu0 %v3747_v46, %s3923_s15  ;;  %v1742_v29 = vsel %vm4584_vm10, %v1737_v27, %v1741_v3  ;;  %v1727_v26 = vrot.slane %v1725_v11, 5  ;;  %v1205_v32 = vrot.slane %v1203_v12, 4  ;;  %v1208_v6 = vrot.slane %v1206_v16, 5  ;;  %v2464_v3 = vld [vmem:[#allocation2 + $0x40] sm:$0xf] }
 0x1b1   : > { %v1752_v39 = vsel %vm4584_vm10, %v1747_v9, %v1751_v40  ;;  %v1713_v28 = vrot.slane %v1712_v10, 4  ;;  %v1722_v55 = vor.u32 %v1721_v22, %v1717_v14  ;;  %v1212_v24 = vshll.u32 %v1134_v7, 16  ;;  %v1939_v11 = vld [vmem:[#allocation2 + $0x30] sm:$0xe]  ;;  %v1940_v10 = vld [vmem:[#allocation2 + $0x34] sm:$0xf] }
 0x1b2   : > { %1630 = vrot.lane.b32.xlu1 %v3748_v25, %s3923_s15  ;;  %v3302_v31 = vcombine.low %v1742_v29, %v1752_v39  ;;  %v1209_v42 = vor.u32 %v1208_v6, %v1205_v32  ;;  %v1216_v43 = vshrl.u32 %v1134_v7, 16  ;;  %v1222_v44 = vshll.u32 %v1135_v57, 16  ;;  %v1942_v29 = vld [vmem:[#allocation2 + $0x3c] sm:$0xe]  ;;  %s3213_s15 = sshll.u32 %s308_s20, 6 }
 0x1b3   : > { %v1718_v20 = vsel %vm4584_vm10, %v1713_v28, %v1717_v14  ;;  %v1723_v23 = vrot.slane %v1722_v55, 4  ;;  %v1214_v47 = vrot.slane %v1212_v24, 5  ;;  %v2206_v2 = vshrl.u32 %v2181_v36, 16  ;;  %v1941_v14 = vld [vmem:[#allocation2 + $0x38] sm:$0x1]  ;;  %s4981_s10 = scalar_lea.vmem [#allocation7], %s3213_s15 }
 0x1b4   : > { %1901 = vrot.lane.b32.xlu0 %v3302_v31, %s3929_s19  ;;  %v1210_v50 = vrot.slane %v1209_v42, 4  ;;  %v1218_v51 = vrot.slane %v1216_v43, 4  ;;  %v1224_v52 = vrot.slane %v1222_v44, 5  ;;  %v2209_v21 = vshll.u32 %v2181_v36, 16  ;;  %v1944_v28 = vld [vmem:[#allocation2 + $0x44] sm:$0x1] }
 0x1b5   : > { %v1728_v54 = vsel %vm4584_vm10, %v1723_v23, %v1727_v26  ;;  %v2208_v56 = vrot.slane %v2206_v2, 4  ;;  %v2215_v13 = vshll.u32 %v2182_v61, 16  ;;  %v2219_v41 = vshrl.u32 %v2182_v61, 16  ;;  %v1943_v26 = vld [vmem:[#allocation2 + $0x40] sm:$0xf]  ;;  %s3799_s15 = sshll.u32 %s3930_s17, 4  ;;  %s3800_s15 = int_to_ptr.vmem [resolvable:$false] %s3799_s15 }
 0x1b6   : > { %v3301_v37 = vcombine.low %v1718_v20, %v1728_v54  ;;  %v1215_v30 = vsel %vm4584_vm10, %v1210_v50, %v1214_v47  ;;  %v1219_v38 = vor.u32 %v1218_v51, %v1214_v47  ;;  %v2211_v60 = vrot.slane %v2209_v21, 5  ;;  %v2190_v43 = vld [vmem:[#allocation2 + $0x3c] sm:$0xf]  ;;  %v2191_v44 = vld [vmem:[#allocation2 + $0x40] sm:$0xf] }
 0x1b7   : > { %v2217_v62 = vrot.slane %v2215_v13, 5  ;;  %v2221_v63 = vrot.slane %v2219_v41, 4  ;;  %v2225_v35 = vshll.u32 %v2183_v45, 16  ;;  %v3281_v18 = vrot.slane %v1418_v48, 9  ;;  %v2192_v47 = vld [vmem:[#allocation2 + $0x44] sm:$0x1] }
 0x1b8   : > { %1899 = vrot.lane.b32.xlu1 %v3301_v37, %s3929_s19  ;;  %2152 = vrot.lane.b32.xlu0 %v3749_v59, %s3922_s16  ;;  %v1220_v15 = vrot.slane %v1219_v38, 4  ;;  %v2212_v40 = vor.u32 %v2211_v60, %v2208_v56  ;;  %v1491_v4 = vrot.slane %v1419_v53, 5  ;;  %v1494_v46 = vrot.slane %v1420_v17, 5  ;;  %v2461_v21 = vld [vmem:[#allocation2 + $0x34] sm:$0xf] }
 0x1b9   : > { %v2222_v5 = vor.u32 %v2221_v63, %v2217_v62  ;;  %v2227_v1 = vrot.slane %v2225_v35, 5  ;;  %v3343_v8 = vrot.slane %v2463_v34, 9  ;;  %v2525_v27 = vrot.slane %v2464_v3, 5  ;;  %v2462_v59 = vld [vmem:[#allocation2 + $0x38] sm:$0x1] }
 0x1ba   : > { %v1225_v7 = vsel %vm4584_vm10, %v1220_v15, %v1224_v52  ;;  %v2213_v12 = vrot.slane %v2212_v40, 4  ;;  %v1492_v16 = vsel %vm4434_vm12, %v3281_v18, %v1491_v4  ;;  %v1493_v9 = vrot.slane %v1491_v4, 4  ;;  %v2460_v52 = vld [vmem:[#allocation2 + $0x30] sm:$0xe]  ;;  %v1142_v3 = vld [vmem:[#allocation2 + $0x3c] sm:$0xf] }
 0x1bb   : > { %v3270_v22 = vcombine.low %v1215_v30, %v1225_v7  ;;  %v2223_v57 = vrot.slane %v2222_v5, 4  ;;  %v2526_v0 = vsel %vm4434_vm12, %v3343_v8, %v2525_v27  ;;  %v2527_v25 = vrot.slane %v2525_v27, 4 }
 0x1bc   : > { %v2218_v32 = vsel %vm4584_vm10, %v2213_v12, %v2217_v62  ;;  %v1495_v6 = vsel %vm4434_vm12, %v1493_v9, %v1494_v46  ;;  %v2528_v36 = vrot.slane %v2465_v58, 5  ;;  %v3311_v39 = vrot.slane %v1939_v11, 9  ;;  %v1143_v62 = vld [vmem:[#allocation2 + $0x40] sm:$0xf] }
 0x1bd   : > { %1374 = vrot.lane.b32.xlu1 %v3270_v22, %s3927_s27  ;;  %v2228_v55 = vsel %vm4584_vm10, %v2223_v57, %v2227_v1  ;;  %v3289_v24 = vcombine.low %v1492_v16, %v1495_v6  ;;  %v2001_v31 = vrot.slane %v1940_v10, 5  ;;  %v2004_v42 = vrot.slane %v1941_v14, 5  ;;  %v1144_v1 = vld [vmem:[#allocation2 + $0x44] sm:$0x1]  ;;  %v1415_v10 = vld [vmem:[#allocation2 + $0x30] sm:$0xe] }
 0x1be   : > { %v3332_v61 = vcombine.low %v2218_v32, %v2228_v55  ;;  %v2529_v45 = vsel %vm4434_vm12, %v2527_v25, %v2528_v36  ;;  %v3312_v20 = vrot.slane %v1942_v29, 9  ;;  %v2008_v23 = vrot.slane %v1943_v26, 5  ;;  %v1416_v25 = vld [vmem:[#allocation2 + $0x34] sm:$0xf]  ;;  %v4731_v29 = vpop.permute.xlu0 %1624  ;;  %v4738_v55 = vpop.permute.xlu1 %2158 }
 0x1bf   : > { %v3351_v2 = vcombine.low %v2526_v0, %v2529_v45  ;;  %v2002_v48 = vsel %vm4434_vm12, %v3311_v39, %v2001_v31  ;;  %v2003_v50 = vrot.slane %v2001_v31, 4  ;;  %v2011_v51 = vrot.slane %v1944_v28, 5  ;;  %v1417_v39 = vld [vmem:[#allocation2 + $0x38] sm:$0x1]  ;;  %v1666_v28 = vld [vmem:[#allocation2 + $0x30] sm:$0xf] }
 0x1c0   : > { %2421 = vrot.lane.b32.xlu0 %v3332_v61, %s3928_s21  ;;  %v2009_v53 = vsel %vm4434_vm12, %v3312_v20, %v2008_v23  ;;  %v2010_v54 = vrot.slane %v2008_v23, 4  ;;  %v2278_v56 = vshrl.u32 %v2190_v43, 16  ;;  %v2281_v13 = vshll.u32 %v2190_v43, 16  ;;  %v1668_v61 = vld [vmem:[#allocation2 + $0x38] sm:$0x1] }
 0x1c1   : > { %1544 = vrot.lane.b32.xlu1 %v3289_v24, %s3924_s12  ;;  %v2005_v41 = vsel %vm4434_vm12, %v2003_v50, %v2004_v42  ;;  %v2287_v17 = vshll.u32 %v2191_v44, 16  ;;  %v2291_v19 = vshrl.u32 %v2191_v44, 16  ;;  %v2297_v37 = vshll.u32 %v2192_v47, 16  ;;  %v1667_v44 = vld [vmem:[#allocation2 + $0x34] sm:$0xf] }
 0x1c2   : > { %v3319_v30 = vcombine.low %v2002_v48, %v2005_v41  ;;  %v2012_v38 = vsel %vm4434_vm12, %v2010_v54, %v2011_v51  ;;  %v2280_v60 = vrot.slane %v2278_v56, 4  ;;  %v2283_v34 = vrot.slane %v2281_v13, 5  ;;  %v1671_v41 = vld [vmem:[#allocation2 + $0x44] sm:$0x1] }
 0x1c3   : > { %v3320_v63 = vcombine.low %v2009_v53, %v2012_v38  ;;  %v2289_v35 = vrot.slane %v2287_v17, 5  ;;  %v2293_v18 = vrot.slane %v2291_v19, 4  ;;  %v2299_v15 = vrot.slane %v2297_v37, 5  ;;  %v4748_v38 = vpop.permute.xlu0 %1636 }
 0x1c4   : > { %2588 = vrot.lane.b32.xlu0 %v3351_v2, %s3926_s18  ;;  %v2284_v40 = vor.u32 %v2283_v34, %v2280_v60  ;;  %v3342_v4 = vrot.slane %v2460_v52, 9  ;;  %v2518_v46 = vrot.slane %v2461_v21, 5  ;;  %v2521_v58 = vrot.slane %v2462_v59, 5  ;;  %v1669_v52 = vld [vmem:[#allocation2 + $0x3c] sm:$0xf] }
 0x1c5   : > { %2064 = vrot.lane.b32.xlu1 %v3319_v30, %s3925_s13  ;;  %v2294_v5 = vor.u32 %v2293_v18, %v2289_v35  ;;  %v1275_v8 = vshrl.u32 %v1142_v3, 16  ;;  %v1278_v27 = vshll.u32 %v1142_v3, 16  ;;  %v1284_v11 = vshll.u32 %v1143_v62, 16  ;;  %v1670_v21 = vld [vmem:[#allocation2 + $0x40] sm:$0xf] }
 0x1c6   : > { %v2285_v7 = vrot.slane %v2284_v40, 4  ;;  %v2519_v12 = vsel %vm4434_vm12, %v3342_v4, %v2518_v46  ;;  %v2520_v16 = vrot.slane %v2518_v46, 4  ;;  %v1288_v9 = vshrl.u32 %v1143_v62, 16  ;;  %v1678_v30 = vld [vmem:[#allocation2 + $0x60] sm:$0xf] }
 0x1c7   : > { %v2295_v14 = vrot.slane %v2294_v5, 4  ;;  %v1277_v22 = vrot.slane %v1275_v8, 4  ;;  %v1280_v57 = vrot.slane %v1278_v27, 5  ;;  %v1286_v0 = vrot.slane %v1284_v11, 5  ;;  %v1679_v4 = vld [vmem:[#allocation2 + $0x64] sm:$0xf] }
 0x1c8   : > { %2066 = vrot.lane.b32.xlu0 %v3320_v63, %s3925_s13  ;;  %v2290_v26 = vsel %vm4584_vm10, %v2285_v7, %v2289_v35  ;;  %v2522_v32 = vsel %vm4434_vm12, %v2520_v16, %v2521_v58  ;;  %v1290_v6 = vrot.slane %v1288_v9, 4  ;;  %v1294_v36 = vshll.u32 %v1144_v1, 16  ;;  %v4754_v63 = vpop.permute.xlu1 %1634  ;;  %v1680_v8 = vld [vmem:[#allocation2 + $0x68] sm:$0x1] }
 0x1c9   : > { %v2300_v24 = vsel %vm4584_vm10, %v2295_v14, %v2299_v15  ;;  %v3350_v31 = vcombine.low %v2519_v12, %v2522_v32  ;;  %v1281_v42 = vor.u32 %v1280_v57, %v1277_v22  ;;  %v3280_v43 = vrot.slane %v1415_v10, 9  ;;  %v2187_v22 = vld [vmem:[#allocation2 + $0x30] sm:$0xf]  ;;  %v2188_v32 = vld [vmem:[#allocation2 + $0x34] sm:$0xf] }
 0x1ca   : > { %v3335_v45 = vcombine.low %v2290_v26, %v2300_v24  ;;  %v1291_v20 = vor.u32 %v1290_v6, %v1286_v0  ;;  %v1296_v23 = vrot.slane %v1294_v36, 5  ;;  %v1484_v47 = vrot.slane %v1416_v25, 5  ;;  %v4760_v6 = vpop.permute.xlu0 %2156 }
 0x1cb   : > { %v1282_v2 = vrot.slane %v1281_v42, 4  ;;  %v1487_v48 = vrot.slane %v1417_v39, 5  ;;  %v1754_v50 = vshrl.u32 %v1666_v28, 16  ;;  %v1757_v51 = vshll.u32 %v1666_v28, 16 }
 0x1cc   : > { %2427 = vrot.lane.b32.xlu1 %v3335_v45, %s3928_s21  ;;  %2586 = vrot.lane.b32.xlu0 %v3350_v31, %s3926_s18  ;;  %v1292_v53 = vrot.slane %v1291_v20, 4  ;;  %v1485_v54 = vsel %vm4434_vm12, %v3280_v43, %v1484_v47  ;;  %v1486_v56 = vrot.slane %v1484_v47, 4  ;;  %v1763_v13 = vshll.u32 %v1667_v44, 16  ;;  %v4762_v31 = vpop.permute.xlu1 %1536 }
 0x1cd   : > { %v1287_v17 = vsel %vm4584_vm10, %v1282_v2, %v1286_v0  ;;  %v1756_v19 = vrot.slane %v1754_v50, 4  ;;  %v1759_v37 = vrot.slane %v1757_v51, 5  ;;  %v1767_v59 = vshrl.u32 %v1667_v44, 16 }
 0x1ce   : > { %v1297_v60 = vsel %vm4584_vm10, %v1292_v53, %v1296_v23  ;;  %v1488_v34 = vsel %vm4434_vm12, %v1486_v56, %v1487_v48  ;;  %v1765_v3 = vrot.slane %v1763_v13, 5  ;;  %v1773_v62 = vshll.u32 %v1668_v61, 16  ;;  %v2189_v53 = vld [vmem:[#allocation2 + $0x38] sm:$0x1]  ;;  %v1139_v13 = vld [vmem:[#allocation2 + $0x30] sm:$0xf] }
 0x1cf   : > { %v3273_v35 = vcombine.low %v1287_v17, %v1297_v60  ;;  %v3288_v18 = vcombine.low %v1485_v54, %v1488_v34  ;;  %v1760_v15 = vor.u32 %v1759_v37, %v1756_v19  ;;  %v1769_v40 = vrot.slane %v1767_v59, 4  ;;  %v1140_v59 = vld [vmem:[#allocation2 + $0x34] sm:$0xf] }
 0x1d0   : > { %v1775_v46 = vrot.slane %v1773_v62, 5  ;;  %v1778_v58 = vshrl.u32 %v1669_v52, 16  ;;  %v1781_v5 = vshll.u32 %v1669_v52, 16  ;;  %v1787_v1 = vshll.u32 %v1670_v21, 16 }
 0x1d1   : > { %1380 = vrot.lane.b32.xlu1 %v3273_v35, %s3927_s27  ;;  %1542 = vrot.lane.b32.xlu0 %v3288_v18, %s3924_s12  ;;  %v1761_v27 = vrot.slane %v1760_v15, 4  ;;  %v1770_v11 = vor.u32 %v1769_v40, %v1765_v3  ;;  %v1791_v7 = vshrl.u32 %v1670_v21, 16  ;;  %v1797_v12 = vshll.u32 %v1671_v41, 16  ;;  %s3459_s12 = sshll.u32 %s3901_s30, 4  ;;  %s3114_s30 = sshll.u32 %s4981_s10, 4  ;;  %s5030_s30 = int_to_ptr.vmem [resolvable:$true] %s3114_s30 }
 0x1d2   : > { %v1780_v16 = vrot.slane %v1778_v58, 4  ;;  %v1783_v9 = vrot.slane %v1781_v5, 5  ;;  %v1789_v10 = vrot.slane %v1787_v1, 5  ;;  %v1850_v14 = vshrl.u32 %v1678_v30, 16  ;;  %v1141_v5 = vld [vmem:[#allocation2 + $0x38] sm:$0x1]  ;;  %p3802_p0 = scmp.lt.s32.totalorder %s5030_s30, %s3800_s15 }
 0x1d3   : > { %v1766_v57 = vsel %vm4584_vm10, %v1761_v27, %v1765_v3  ;;  %v1771_v0 = vrot.slane %v1770_v11, 4  ;;  %v1793_v25 = vrot.slane %v1791_v7, 4  ;;  %v1799_v26 = vrot.slane %v1797_v12, 5  ;;  %v1675_v27 = vld [vmem:[#allocation2 + $0x54] sm:$0xf]  ;;  %s3795_s22 = scalar_lea.vmem %s5030_s30, 1024 }
 0x1d4   : > { %v1784_v36 = vor.u32 %v1783_v9, %v1780_v16  ;;  %v1852_v39 = vrot.slane %v1850_v14, 4  ;;  %v1853_v28 = vshll.u32 %v1678_v30, 16  ;;  %v1859_v24 = vshll.u32 %v1679_v4, 16  ;;  %v4771_v30 = vpop.permute.xlu0 %2058  ;;  %v1676_v9 = vld [vmem:[#allocation2 + $0x58] sm:$0xf]  ;;  %p3796_p7 = scmp.ne.s32.totalorder %s5030_s30, %s3795_s22 }
 0x1d5   : > { %v1776_v42 = vsel %vm4584_vm10, %v1771_v0, %v1775_v46  ;;  %v1794_v43 = vor.u32 %v1793_v25, %v1789_v10  ;;  %v1863_v44 = vshrl.u32 %v1679_v4, 16  ;;  %v1869_v61 = vshll.u32 %v1680_v8, 16  ;;  %v4773_v35 = vpop.permute.xlu1 %1548 }
 0x1d6   : > { %v3303_v45 = vcombine.low %v1766_v57, %v1776_v42  ;;  %v1785_v20 = vrot.slane %v1784_v36, 4  ;;  %v1855_v23 = vrot.slane %v1853_v28, 5  ;;  %v1861_v47 = vrot.slane %v1859_v24, 5  ;;  %p3797_p2 = pnand %p3796_p7, %p5166_p12 }
 0x1d7   : > { %v1795_v2 = vrot.slane %v1794_v43, 4  ;;  %v1865_v48 = vrot.slane %v1863_v44, 4  ;;  %v1871_v50 = vrot.slane %v1869_v61, 5  ;;  %v2254_v51 = vshrl.u32 %v2187_v22, 16  ;;  %v1951_v44 = vld [vmem:[#allocation2 + $0x60] sm:$0xe] }
 0x1d8   : > { %1903 = vrot.lane.b32.xlu1 %v3303_v45, %s3929_s19  ;;  %v1790_v52 = vsel %vm4584_vm10, %v1785_v20, %v1789_v10  ;;  %v1856_v21 = vor.u32 %v1855_v23, %v1852_v39  ;;  %v2257_v54 = vshll.u32 %v2187_v22, 16  ;;  %v2263_v56 = vshll.u32 %v2188_v32, 16  ;;  %v1952_v61 = vld [vmem:[#allocation2 + $0x64] sm:$0xf]  ;;  %p3798_p4 = pneg %p3797_p2 }
 0x1d9   : > { %v1800_v41 = vsel %vm4584_vm10, %v1795_v2, %v1799_v26  ;;  %v1866_v17 = vor.u32 %v1865_v48, %v1861_v47  ;;  %v2256_v19 = vrot.slane %v2254_v51, 4  ;;  %v2267_v37 = vshrl.u32 %v2188_v32, 16  ;;  %v1677_v32 = vld [vmem:[#allocation2 + $0x5c] sm:$0x1]  ;;  %v4780_v39 = vpop.permute.xlu0 %2592  ;;  %v1953_v48 = vld [vmem:[#allocation2 + $0x68] sm:$0x1] }
 0x1da   : > { %v3304_v60 = vcombine.low %v1790_v52, %v1800_v41  ;;  %v1857_v34 = vrot.slane %v1856_v21, 4  ;;  %v2259_v3 = vrot.slane %v2257_v54, 5  ;;  %v2265_v62 = vrot.slane %v2263_v56, 5 }
 0x1db   : > { %v1867_v18 = vrot.slane %v1866_v17, 4  ;;  %v2269_v15 = vrot.slane %v2267_v37, 4  ;;  %v2273_v40 = vshll.u32 %v2189_v53, 16  ;;  %v1251_v4 = vshrl.u32 %v1139_v13, 16  ;;  %v1948_v53 = vld [vmem:[#allocation2 + $0x54] sm:$0xe] }
 0x1dc   : > { %1905 = vrot.lane.b32.xlu0 %v3304_v60, %s3929_s19  ;;  %v1862_v46 = vsel %vm4584_vm10, %v1857_v34, %v1861_v47  ;;  %v2260_v58 = vor.u32 %v2259_v3, %v2256_v19  ;;  %v1254_v1 = vshll.u32 %v1139_v13, 16  ;;  %v1260_v8 = vshll.u32 %v1140_v59, 16  ;;  %v4785_v45 = vpop.permute.xlu1 %1534  ;;  %v1949_v17 = vld [vmem:[#allocation2 + $0x58] sm:$0xf]  ;;  %v2202_v60 = vld [vmem:[#allocation2 + $0x6c] sm:$0xf] }
 0x1dd   : > { %v1872_v11 = vsel %vm4584_vm10, %v1867_v18, %v1871_v50  ;;  %v2270_v7 = vor.u32 %v2269_v15, %v2265_v62  ;;  %v2275_v12 = vrot.slane %v2273_v40, 5  ;;  %v1253_v16 = vrot.slane %v1251_v4, 4  ;;  %v1950_v15 = vld [vmem:[#allocation2 + $0x5c] sm:$0x1] }
 0x1de   : > { %v3307_v10 = vcombine.low %v1862_v46, %v1872_v11  ;;  %v2261_v14 = vrot.slane %v2260_v58, 4  ;;  %v1256_v22 = vrot.slane %v1254_v1, 5  ;;  %v1262_v57 = vrot.slane %v1260_v8, 5 }
 0x1df   : > { %v2271_v0 = vrot.slane %v2270_v7, 4  ;;  %v1264_v25 = vshrl.u32 %v1140_v59, 16  ;;  %v1270_v26 = vshll.u32 %v1141_v5, 16  ;;  %v1826_v36 = vshrl.u32 %v1675_v27, 16  ;;  %v2203_v7 = vld [vmem:[#allocation2 + $0x70] sm:$0xf] }
 0x1e0   : > { %1911 = vrot.lane.b32.xlu1 %v3307_v10, %s3929_s19  ;;  %v2266_v28 = vsel %vm4584_vm10, %v2261_v14, %v2265_v62  ;;  %v1257_v24 = vor.u32 %v1256_v22, %v1253_v16  ;;  %v1829_v42 = vshll.u32 %v1675_v27, 16  ;;  %v1835_v43 = vshll.u32 %v1676_v9, 16 }
 0x1e1   : > { %v2276_v20 = vsel %vm4584_vm10, %v2271_v0, %v2275_v12  ;;  %v1266_v23 = vrot.slane %v1264_v25, 4  ;;  %v1272_v47 = vrot.slane %v1270_v26, 5  ;;  %v1828_v2 = vrot.slane %v1826_v36, 4  ;;  %v2204_v12 = vld [vmem:[#allocation2 + $0x74] sm:$0x1] }
 0x1e2   : > { %v3334_v50 = vcombine.low %v2266_v28, %v2276_v20  ;;  %v1258_v51 = vrot.slane %v1257_v24, 4  ;;  %v1831_v52 = vrot.slane %v1829_v42, 5  ;;  %v1837_v21 = vrot.slane %v1835_v43, 5  ;;  %v2200_v20 = vld [vmem:[#allocation2 + $0x64] sm:$0xf] }
 0x1e3   : > { %v1267_v54 = vor.u32 %v1266_v23, %v1262_v57  ;;  %v1839_v56 = vshrl.u32 %v1676_v9, 16  ;;  %v1845_v13 = vshll.u32 %v1677_v32, 16  ;;  %v3315_v41 = vrot.slane %v1951_v44, 9  ;;  %v2201_v23 = vld [vmem:[#allocation2 + $0x68] sm:$0x1] }
 0x1e4   : > { %2425 = vrot.lane.b32.xlu0 %v3334_v50, %s3928_s21  ;;  %v1832_v19 = vor.u32 %v1831_v52, %v1828_v2  ;;  %v2029_v37 = vrot.slane %v1952_v61, 5  ;;  %v2032_v59 = vrot.slane %v1953_v48, 5  ;;  %v1263_v34 = vsel %vm4584_vm10, %v1258_v51, %v1262_v57  ;;  %v4792_v40 = vpop.permute.xlu0 %2590  ;;  %v2199_v57 = vld [vmem:[#allocation2 + $0x60] sm:$0xf] }
 0x1e5   : > { %v1268_v3 = vrot.slane %v1267_v54, 4  ;;  %v1841_v62 = vrot.slane %v1839_v56, 4  ;;  %v1847_v18 = vrot.slane %v1845_v13, 5  ;;  %v3314_v58 = vrot.slane %v1948_v53, 9  ;;  %v2476_v53 = vld [vmem:[#allocation2 + $0x70] sm:$0xf] }
 0x1e6   : > { %v1833_v4 = vrot.slane %v1832_v19, 4  ;;  %v2031_v46 = vrot.slane %v2029_v37, 4  ;;  %v2022_v5 = vrot.slane %v1949_v17, 5  ;;  %v4794_v1 = vpop.permute.xlu1 %2068  ;;  %v2030_v11 = vsel %vm4434_vm12, %v3315_v41, %v2029_v37  ;;  %v3750_v37 = vld [vmem:[#allocation2 + $0x6c] sm:$0xff]  }
 0x1e7   : > { %v1273_v8 = vsel %vm4584_vm10, %v1268_v3, %v1272_v47  ;;  %v1842_v27 = vor.u32 %v1841_v62, %v1837_v21  ;;  %v2374_v16 = vshrl.u32 %v2202_v60, 16  ;;  %v2025_v22 = vrot.slane %v1950_v15, 5  ;;  %v2477_v15 = vld [vmem:[#allocation2 + $0x74] sm:$0x1] }
 0x1e8   : > { %v3272_v9 = vcombine.low %v1263_v34, %v1273_v8  ;;  %v1838_v10 = vsel %vm4584_vm10, %v1833_v4, %v1837_v21  ;;  %v2033_v14 = vsel %vm4434_vm12, %v2031_v46, %v2032_v59  ;;  %v2023_v25 = vsel %vm4434_vm12, %v3314_v58, %v2022_v5  ;;  %v2475_v21 = vld [vmem:[#allocation2 + $0x6c] sm:$0xe]  ;;  %v2472_v58 = vld [vmem:[#allocation2 + $0x60] sm:$0xe]  ;;  %v3753_v8 = vld [vmem:[#allocation2 + $0x54] sm:$0xff]  }
 0x1e9   : > { %v1843_v0 = vrot.slane %v1842_v27, 4  ;;  %v2024_v26 = vrot.slane %v2022_v5, 4  ;;  %v2376_v32 = vrot.slane %v2374_v16, 4  ;;  %v4806_v36 = vpop.permute.xlu0 %1546  ;;  %v2377_v28 = vshll.u32 %v2202_v60, 16  ;;  %v3752_v5 = vld [vmem:[#allocation2 + $0xc] sm:$0xff]   ;;  %v3754_v27 = vld [vmem:[#allocation2] sm:$0xff]  }
 0x1ea   : > { %1378 = vrot.lane.b32.xlu1 %v3272_v9, %s3927_s27  ;;  %v2383_v24 = vshll.u32 %v2203_v7, 16  ;;  %v2387_v42 = vshrl.u32 %v2203_v7, 16  ;;  %v2393_v43 = vshll.u32 %v2204_v12, 16  ;;  %v3323_v61 = vcombine.low %v2030_v11, %v2033_v14  ;;  %v4813_v54 = vpop.permute.xlu1 %2150  ;;  %v3755_v11 = vld [vmem:[#allocation2 + $0x48] sm:$0xff]  }
 0x1eb   : > { %v1848_v44 = vsel %vm4584_vm10, %v1843_v0, %v1847_v18  ;;  %v2350_v47 = vshrl.u32 %v2199_v57, 16  ;;  %v2353_v2 = vshll.u32 %v2199_v57, 16  ;;  %v2026_v50 = vsel %vm4434_vm12, %v2024_v26, %v2025_v22  ;;  %v3756_v14 = vld [vmem:[#allocation2 + $0x24] sm:$0xff]   ;;  %v3760_v26 = vld [vmem:[#allocation2 + $0x18] sm:$0xff]  }
 0x1ec   : > { %v3306_v48 = vcombine.low %v1838_v10, %v1848_v44  ;;  %v2379_v51 = vrot.slane %v2377_v28, 5  ;;  %v2385_v52 = vrot.slane %v2383_v24, 5  ;;  %v2389_v56 = vrot.slane %v2387_v42, 4  ;;  %v2473_v10 = vld [vmem:[#allocation2 + $0x64] sm:$0xf]  ;;  %v3764_v28 = vld [vmem:[#allocation2 + $0x30] sm:$0xff]  }
 0x1ed   : > { %v2395_v13 = vrot.slane %v2393_v43, 5  ;;  %v2352_v41 = vrot.slane %v2350_v47, 4  ;;  %v2355_v17 = vrot.slane %v2353_v2, 5  ;;  %v4815_v19 = vpop.permute.xlu0 %1628  ;;  %v2359_v60 = vshll.u32 %v2200_v20, 16  ;;  %v2474_v44 = vld [vmem:[#allocation2 + $0x68] sm:$0x1] }
 0x1ee   : > { %1909 = vrot.lane.b32.xlu0 %v3306_v48, %s3929_s19  ;;  %2072 = vrot.lane.b32.xlu1 %v3323_v61, %s3925_s13  ;;  %v2380_v59 = vor.u32 %v2379_v51, %v2376_v32  ;;  %v2363_v34 = vshrl.u32 %v2200_v20, 16  ;;  %v2369_v3 = vshll.u32 %v2201_v23, 16  ;;  %v2390_v62 = vor.u32 %v2389_v56, %v2385_v52  ;;  %v3763_v32 = vld [vmem:[#allocation2 + $0x3c] sm:$0xff]   ;;  %v1627_v61 = vpop.permute.xlu1 %1626  ;;  %s5045_s19 = scalar_lea.sflag [#allocation6], %s308_s20 }
 0x1ef   : > { %v2356_v18 = vor.u32 %v2355_v17, %v2352_v41  ;;  %v3347_v4 = vrot.slane %v2475_v21, 9  ;;  %v2553_v46 = vrot.slane %v2476_v53, 5  ;;  %v3322_v7 = vcombine.low %v2023_v25, %v2026_v50  ;;  %v3751_v50 = vld [vmem:[#allocation2 + $0x60] sm:$0xff]  }
 0x1f0   : > { %v2381_v12 = vrot.slane %v2380_v59, 4  ;;  %v2361_v16 = vrot.slane %v2359_v60, 5  ;;  %v2365_v9 = vrot.slane %v2363_v34, 4  ;;  %v2391_v22 = vrot.slane %v2390_v62, 4 }
 0x1f1   : > { %v2357_v57 = vrot.slane %v2356_v18, 4  ;;  %v2555_v0 = vrot.slane %v2553_v46, 4  ;;  %v2371_v25 = vrot.slane %v2369_v3, 5  ;;  %v2556_v43 = vrot.slane %v2477_v15, 5  ;;  %v1373_v48 = vpop.permute.xlu0 %1372 }
 0x1f2   : > { %2070 = vrot.lane.b32.xlu0 %v3322_v7, %s3925_s13  ;;  %2162 = vrot.lane.b32.xlu1 %v3750_v37, %s3922_s16  ;;  %v2386_v24 = vsel %vm4584_vm10, %v2381_v12, %v2385_v52  ;;  %v2366_v42 = vor.u32 %v2365_v9, %v2361_v16  ;;  %v2396_v20 = vsel %vm4584_vm10, %v2391_v22, %v2395_v13  ;;  %v3346_v47 = vrot.slane %v2472_v58, 9  ;;  %v3762_v13 = vld [vmem:[%s5111_s3 + $0x20] ss:$0 sps:$4 sm:$0xff]   ;;  %s3416_s13 = sshll.u32 %s3905_s8, 5 }
 0x1f3   : > { %v2554_v23 = vsel %vm4434_vm12, %v3347_v4, %v2553_v46  ;;  %v2546_v2 = vrot.slane %v2473_v10, 5  ;;  %v3339_v51 = vcombine.low %v2386_v24, %v2396_v20  ;;  %v2362_v21 = vsel %vm4584_vm10, %v2357_v57, %v2361_v16 }
 0x1f4   : > { %v2367_v52 = vrot.slane %v2366_v42, 4  ;;  %vm1118_vm4 = vcmask 64512   ;;  %v2557_v53 = vsel %vm4434_vm12, %v2555_v0, %v2556_v43  ;;  %v2549_v41 = vrot.slane %v2474_v44, 5  ;;  %v4849_v60 = vpop.permute.xlu1 %2431 }
 0x1f5   : > { %v2548_v56 = vrot.slane %v2546_v2, 4  ;;  %1120 = vst.msk [vmem:[#allocation3 + $0x8] sm:$0xff] %vm1118_vm4, %v3752_v5  ;;  %vm1394_vm7 = vcmask 130112   ;;  %1126 = vst.msk [vmem:[#allocation3 + $0x38] sm:$0xff] %vm1118_vm4, %v3753_v8  ;;  %vm1558_vm8 = vcmask 195712   ;;  %vm1648_vm2 = vcmask 261312  }
 0x1f6   : > { %1119 = vst.msk [vmem:[#allocation3] sm:$0xff] %vm1118_vm4, %v3754_v27  ;;  %1125 = vst.msk [vmem:[#allocation3 + $0x30] sm:$0xff] %vm1118_vm4, %v3755_v11  ;;  %2160 = vrot.lane.b32.xlu0 %v3751_v50, %s3922_s16  ;;  %2435 = vrot.lane.b32.xlu1 %v3339_v51, %s3928_s21  ;;  %v2372_v17 = vsel %vm4584_vm10, %v2367_v52, %v2371_v25  ;;  %v3355_v59 = vcombine.low %v2554_v23, %v2557_v53  ;;  %vm2691_vm3 = vcmask 1043456   ;;  %vm1921_vm5 = vcmask 326912  }
 0x1f7   : > { %1122 = vst.msk [vmem:[#allocation3 + $0x18] sm:$0xff] %vm1118_vm4, %v3756_v14  ;;  %1121 = vst.msk [vmem:[#allocation3 + $0x10] sm:$0xff] %vm1118_vm4, %v3760_v26  ;;  %v3338_v37 = vcombine.low %v2362_v21, %v2372_v17  ;;  %v2547_v34 = vsel %vm4434_vm12, %v3346_v47, %v2546_v2  ;;  %v2550_v49 = vsel %vm4434_vm12, %v2548_v56, %v2549_v41  ;;  %3606 = vmatprep.subr.msk.bf16.mxu1 %vm2691_vm3, %v3762_v13  ;;  %vm2082_vm6 = vcmask 392512   ;;  %v2816_v41 = vld [vmem:[%s5113_s5] sm:$0xf] }
 0x1f8   : > { %1124 = vst.msk [vmem:[#allocation3 + $0x28] sm:$0xff] %vm1118_vm4, %v3763_v32  ;;  %1123 = vst.msk [vmem:[#allocation3 + $0x20] sm:$0xff] %vm1118_vm4, %v3764_v28  ;;  %v2693_v3 = vsel %vm2691_vm3, %v3762_v13, 0  ;;  %v3354_v62 = vcombine.low %v2547_v34, %v2550_v49  ;;  %vm2172_vm9 = vcmask 458112   ;;  %vm2445_vm12 = vcmask 523712   ;;  %3607 = vmatprep.subr.msk.bf16.mxu0 %vm2691_vm3, %v2816_v41 }
 0x1f9   : > { %1396 = vst.msk [vmem:[#allocation3 + $0x8] sm:$0xff] %vm1394_vm7, %v1373_v48  ;;  %3567 = vmatpush3.bf16.msra.mxu1 %v2693_v3  ;;  %vm2606_vm13 = vcmask 589312   ;;  %vm2666_vm14 = vcmask 588800   ;;  %v2885_v13 = vsel %vm2691_vm3, %v2816_v41, 0  ;;  %v3356_v17 = vld [vmem:[%s5112_s4] ss:$0 sm:$0xff] }
 0x1fa   : > { %1560 = vst.msk [vmem:[#allocation3 + $0x8] sm:$0xff] %vm1558_vm8, %v4762_v31  ;;  %2433 = vrot.lane.b32.xlu0 %v3338_v37, %s3928_s21  ;;  %2596 = vrot.lane.b32.xlu1 %v3355_v59, %s3926_s18  ;;  %v1898_v31 = vpop.permute.xlu0 %1897  ;;  %vm3080_vm15 = vcmask 257024  }
 0x1fb   : > { %1650 = vst.msk [vmem:[#allocation3 + $0x8] sm:$0xff] %vm1648_vm2, %v1627_v61  ;;  %3585 = vmatpush3.bf16.msra.mxu0 %v2885_v13 }
 0x1fe   : > { %2594 = vrot.lane.b32.xlu0 %v3354_v62, %s3926_s18  ;;  %v1385_v18 = vpop.permute.xlu1 %1384  ;;  %v2149_v33 = vpop.permute.xlu0 %2148 }
 0x1ff   : > { %1402 = vst.msk [vmem:[#allocation3 + $0x38] sm:$0xff] %vm1394_vm7, %v1385_v18 }
 0x200   : > { %1566 = vst.msk [vmem:[#allocation3 + $0x38] sm:$0xff] %vm1558_vm8, %v4773_v35 }
 0x202   : > { %v1639_v15 = vpop.permute.xlu1 %1638 }
 0x203   : > { %1656 = vst.msk [vmem:[#allocation3 + $0x38] sm:$0xff] %vm1648_vm2, %v1639_v15 }
 0x206   : > { %v4865_v4 = vpop.permute.xlu1 %1907  ;;  %v1371_v46 = vpop.permute.xlu0 %1370 }
 0x207   : > { %1395 = vst.msk [vmem:[#allocation3] sm:$0xff] %vm1394_vm7, %v1371_v46 }
 0x208   : > { %1559 = vst.msk [vmem:[#allocation3] sm:$0xff] %vm1558_vm8, %v4785_v45 }
 0x209   : > { %1649 = vst.msk [vmem:[#allocation3] sm:$0xff] %vm1648_vm2, %v4731_v29 }
 0x20a   : > { %v1383_v58 = vpop.permute.xlu1 %1382  ;;  %1922 = vst.msk [vmem:[#allocation3] sm:$0xff] %vm1921_vm5, %v1898_v31 }
 0x20b   : > { %1401 = vst.msk [vmem:[#allocation3 + $0x30] sm:$0xff] %vm1394_vm7, %v1383_v58 }
 0x20c   : > { %2083 = vst.msk [vmem:[#allocation3] sm:$0xff] %vm2082_vm6, %v4771_v30 }
 0x20d   : > { %1565 = vst.msk [vmem:[#allocation3 + $0x30] sm:$0xff] %vm1558_vm8, %v4806_v36 }
 0x20e   : > { %2173 = vst.msk [vmem:[#allocation3] sm:$0xff] %vm2172_vm9, %v2149_v33  ;;  %v4881_v35 = vpop.permute.xlu0 %2429  ;;  %v1541_v29 = vpop.permute.xlu1 %1540 }
 0x20f   : > { %1655 = vst.msk [vmem:[#allocation3 + $0x30] sm:$0xff] %vm1648_vm2, %v4748_v38 }
 0x212   : > { %v2585_v45 = vpop.permute.xlu0 %2584  ;;  %v2061_v5 = vpop.permute.xlu1 %2060 }
 0x216   : > { %v2063_v8 = vpop.permute.xlu0 %2062  ;;  %v2155_v27 = vpop.permute.xlu1 %2154 }
 0x21a   : > { %v2583_v11 = vpop.permute.xlu0 %2582 }
 0x21c   : > { %v2424_v7 = vpop.permute.xlu1 %2423 }
 0x21e   : > { %v1539_v12 = vpop.permute.xlu0 %1538 }
 0x220   : > { %v1377_v16 = vpop.permute.xlu1 %1376 }
 0x221   : > { %1398 = vst.msk [vmem:[#allocation3 + $0x18] sm:$0xff] %vm1394_vm7, %v1377_v16 }
 0x222   : > { %1562 = vst.msk [vmem:[#allocation3 + $0x18] sm:$0xff] %vm1558_vm8, %v1541_v29  ;;  %v1633_v30 = vpop.permute.xlu0 %1632 }
 0x224   : > { %v1631_v36 = vpop.permute.xlu1 %1630 }
 0x225   : > { %1652 = vst.msk [vmem:[#allocation3 + $0x18] sm:$0xff] %vm1648_vm2, %v1631_v36 }
 0x226   : > { %v1902_v38 = vpop.permute.xlu0 %1901 }
 0x22a   : > { %v1900_v9 = vpop.permute.xlu1 %1899  ;;  %v2153_v10 = vpop.permute.xlu0 %2152 }
 0x22b   : > { %1923 = vst.msk [vmem:[#allocation3 + $0x8] sm:$0xff] %vm1921_vm5, %v1900_v9 }
 0x22c   : > { %2084 = vst.msk [vmem:[#allocation3 + $0x8] sm:$0xff] %vm2082_vm6, %v2061_v5 }
 0x22d   : > { %2174 = vst.msk [vmem:[#allocation3 + $0x8] sm:$0xff] %vm2172_vm9, %v4813_v54 }
 0x22e   : > { %2447 = vst.msk [vmem:[#allocation3 + $0x8] sm:$0xff] %vm2445_vm12, %v2424_v7 }
 0x22f   : > { %2608 = vst.msk [vmem:[#allocation3 + $0x8] sm:$0xff] %vm2606_vm13, %v2585_v45  ;;  %v1375_v14 = vpop.permute.xlu1 %1374 }
 0x230   : > { %1397 = vst.msk [vmem:[#allocation3 + $0x10] sm:$0xff] %vm1394_vm7, %v1375_v14 }
 0x231   : > { %1561 = vst.msk [vmem:[#allocation3 + $0x10] sm:$0xff] %vm1558_vm8, %v1539_v12 }
 0x232   : > { %1651 = vst.msk [vmem:[#allocation3 + $0x10] sm:$0xff] %vm1648_vm2, %v4815_v19  ;;  %v2422_v22 = vpop.permute.xlu0 %2421 }
 0x233   : > { %1924 = vst.msk [vmem:[#allocation3 + $0x10] sm:$0xff] %vm1921_vm5, %v1902_v38  ;;  %v1545_v57 = vpop.permute.xlu1 %1544 }
 0x234   : > { %2446 = vst.msk [vmem:[#allocation3] sm:$0xff] %vm2445_vm12, %v2422_v22 }
 0x235   : > { %2607 = vst.msk [vmem:[#allocation3] sm:$0xff] %vm2606_vm13, %v2583_v11 }
 0x236   : > { %2085 = vst.msk [vmem:[#allocation3 + $0x10] sm:$0xff] %vm2082_vm6, %v2063_v8  ;;  %v2589_v54 = vpop.permute.xlu0 %2588  ;;  %v2616_v32 = vld [vmem:[#allocation3 + $0x8] sm:$0xff] }
 0x237   : > { %2175 = vst.msk [vmem:[#allocation3 + $0x10] sm:$0xff] %vm2172_vm9, %v2153_v10  ;;  %v2065_v0 = vpop.permute.xlu1 %2064 }
 0x23a   : > { %v2067_v19 = vpop.permute.xlu0 %2066 }
 0x23c   : > { %v2615_v26 = vld [vmem:[#allocation3] sm:$0xff] }
 0x23d   : > { %3568 = vmatprep.mubr.msk.bf16.mxu1 %vm2666_vm14, %v2615_v26 }
 0x23e   : > { %3569 = vmatmul.mubr.msk.bf16.vlgmr.msra.gmra.mrb[8].mxu1 %vm2666_vm14, %v2616_v32  ;;  %v2428_v28 = vpop.permute.xlu1 %2427  ;;  %v2587_v42 = vpop.permute.xlu0 %2586 }
 0x243   : > { %v1381_v24 = vpop.permute.xlu1 %1380  ;;  %v1543_v25 = vpop.permute.xlu0 %1542 }
 0x244   : > { %1400 = vst.msk [vmem:[#allocation3 + $0x28] sm:$0xff] %vm1394_vm7, %v1381_v24 }
 0x245   : > { %1564 = vst.msk [vmem:[#allocation3 + $0x28] sm:$0xff] %vm1558_vm8, %v1545_v57 }
 0x246   : > { %1654 = vst.msk [vmem:[#allocation3 + $0x28] sm:$0xff] %vm1648_vm2, %v4754_v63 }
 0x247   : > { %1927 = vst.msk [vmem:[#allocation3 + $0x28] sm:$0xff] %vm1921_vm5, %v4865_v4 }
 0x248   : > { %2088 = vst.msk [vmem:[#allocation3 + $0x28] sm:$0xff] %vm2082_vm6, %v4794_v1 }
 0x249   : > { %2178 = vst.msk [vmem:[#allocation3 + $0x28] sm:$0xff] %vm2172_vm9, %v4738_v55 }
 0x24a   : > { %2451 = vst.msk [vmem:[#allocation3 + $0x28] sm:$0xff] %vm2445_vm12, %v4849_v60  ;;  %v1904_v43 = vpop.permute.xlu1 %1903 }
 0x24b   : > { %2612 = vst.msk [vmem:[#allocation3 + $0x28] sm:$0xff] %vm2606_vm13, %v4780_v39 }
 0x24c   : > { %1925 = vst.msk [vmem:[#allocation3 + $0x18] sm:$0xff] %vm1921_vm5, %v1904_v43 }
 0x24d   : > { %2086 = vst.msk [vmem:[#allocation3 + $0x18] sm:$0xff] %vm2082_vm6, %v2065_v0 }
 0x24e   : > { %2176 = vst.msk [vmem:[#allocation3 + $0x18] sm:$0xff] %vm2172_vm9, %v2155_v27  ;;  %v1906_v63 = vpop.permute.xlu0 %1905 }
 0x24f   : > { %2449 = vst.msk [vmem:[#allocation3 + $0x18] sm:$0xff] %vm2445_vm12, %v2428_v28 }
 0x250   : > { %2610 = vst.msk [vmem:[#allocation3 + $0x18] sm:$0xff] %vm2606_vm13, %v2589_v54 }
 0x252   : > { %v1912_v55 = vpop.permute.xlu1 %1911  ;;  %v2620_v52 = vld [vmem:[#allocation3 + $0x28] sm:$0xff] }
 0x253   : > { %1929 = vst.msk [vmem:[#allocation3 + $0x38] sm:$0xff] %vm1921_vm5, %v1912_v55 }
 0x256   : > { %v2426_v1 = vpop.permute.xlu0 %2425 }
 0x257   : > { %2448 = vst.msk [vmem:[#allocation3 + $0x10] sm:$0xff] %vm2445_vm12, %v2426_v1  ;;  %v2618_v23 = vld [vmem:[#allocation3 + $0x18] sm:$0xff] }
 0x258   : > { %2609 = vst.msk [vmem:[#allocation3 + $0x10] sm:$0xff] %vm2606_vm13, %v2587_v42 }
 0x25c   : > { %v1379_v39 = vpop.permute.xlu1 %1378 }
 0x25d   : > { %1399 = vst.msk [vmem:[#allocation3 + $0x20] sm:$0xff] %vm1394_vm7, %v1379_v39 }
 0x25e   : > { %1563 = vst.msk [vmem:[#allocation3 + $0x20] sm:$0xff] %vm1558_vm8, %v1543_v25 }
 0x25f   : > { %1653 = vst.msk [vmem:[#allocation3 + $0x20] sm:$0xff] %vm1648_vm2, %v1633_v30  ;;  %v2617_v44 = vld [vmem:[#allocation3 + $0x10] sm:$0xff] }
 0x260   : > { %1926 = vst.msk [vmem:[#allocation3 + $0x20] sm:$0xff] %vm1921_vm5, %v1906_v63  ;;  %v1910_v61 = vpop.permute.xlu0 %1909  ;;  %v2073_v20 = vpop.permute.xlu1 %2072  ;;  %3572 = vmatprep.mubr.msk.bf16.mxu1 %vm2666_vm14, %v2617_v44 }
 0x261   : > { %2087 = vst.msk [vmem:[#allocation3 + $0x20] sm:$0xff] %vm2082_vm6, %v2067_v19  ;;  %2090 = vst.msk [vmem:[#allocation3 + $0x38] sm:$0xff] %vm2082_vm6, %v2073_v20  ;;  %3573 = vmatmul.mubr.msk.bf16.gmra.mrb[12].mxu1 %vm2666_vm14, %v2618_v23 }
 0x262   : > { %1928 = vst.msk [vmem:[#allocation3 + $0x30] sm:$0xff] %vm1921_vm5, %v1910_v61 }
 0x263   : > { %2177 = vst.msk [vmem:[#allocation3 + $0x20] sm:$0xff] %vm2172_vm9, %v4760_v6 }
 0x264   : > { %2450 = vst.msk [vmem:[#allocation3 + $0x20] sm:$0xff] %vm2445_vm12, %v4881_v35  ;;  %v2071_v47 = vpop.permute.xlu0 %2070  ;;  %v2163_v2 = vpop.permute.xlu1 %2162 }
 0x265   : > { %2611 = vst.msk [vmem:[#allocation3 + $0x20] sm:$0xff] %vm2606_vm13, %v4792_v40 }
 0x266   : > { %2089 = vst.msk [vmem:[#allocation3 + $0x30] sm:$0xff] %vm2082_vm6, %v2071_v47 }
 0x267   : > { %2180 = vst.msk [vmem:[#allocation3 + $0x38] sm:$0xff] %vm2172_vm9, %v2163_v2 }
 0x268   : > { %v2161_v48 = vpop.permute.xlu0 %2160  ;;  %v2436_v50 = vpop.permute.xlu1 %2435 }
 0x269   : > { %2179 = vst.msk [vmem:[#allocation3 + $0x30] sm:$0xff] %vm2172_vm9, %v2161_v48 }
 0x26a   : > { %2453 = vst.msk [vmem:[#allocation3 + $0x38] sm:$0xff] %vm2445_vm12, %v2436_v50 }
 0x26c   : > { %v2619_v51 = vld [vmem:[#allocation3 + $0x20] sm:$0xff]  ;;  %v2434_v6 = vpop.permute.xlu0 %2433  ;;  %v2597_v21 = vpop.permute.xlu1 %2596 }
 0x26d   : > { %3576 = vmatprep.mubr.msk.bf16.mxu1 %vm2666_vm14, %v2619_v51  ;;  %2452 = vst.msk [vmem:[#allocation3 + $0x30] sm:$0xff] %vm2445_vm12, %v2434_v6 }
 0x26e   : > { %2614 = vst.msk [vmem:[#allocation3 + $0x38] sm:$0xff] %vm2606_vm13, %v2597_v21  ;;  %3577 = vmatmul.mubr.msk.bf16.gmra.mrb[16].mxu1 %vm2666_vm14, %v2620_v52  ;;  %v3493_v21 = vld [vmem:[%s4124_s29 + $0x10] sm:$0xff]   ;;  %v3492_v52 = vld [vmem:[%s4124_s29 + $0x8] sm:$0xff]  }
 0x26f   : > { %v3462_v41 = vunpack.c.l.bf16 %v3492_v52 }
 0x270   : > { %v2595_v40 = vpop.permute.xlu0 %2594 }
 0x271   : > { %2613 = vst.msk [vmem:[#allocation3 + $0x30] sm:$0xff] %vm2606_vm13, %v2595_v40  ;;  %v4972_v40 = vld [vmem:[%s5114_s6] ss:$0 sm:$0xff] }
 0x275   : > { %v2622_v53 = vld [vmem:[#allocation3 + $0x38] sm:$0xff] }
 0x278   : > { %v2621_v56 = vld [vmem:[#allocation3 + $0x30] sm:$0xff] }
 0x279   : > { %3580 = vmatprep.mubr.msk.bf16.mxu1 %vm2666_vm14, %v2621_v56 }
 0x27a   : > { %3581 = vmatmul.mubr.msk.bf16.gmra.mrb[20].mxu1 %vm2666_vm14, %v2622_v53  ;;  %v3466_v53 = vunpack.c.l.bf16 %v3493_v21 }
 0x311   : > { %v3570_v37 = vpop.f32.mrb[8].mxu1 }
 0x312   : > { %v2738_v59 = vadd.f32 %v3570_v37, %v3356_v17  ;;  %v2729_v60 = vpop.f32.mrb[9].mxu1  ;;  %v3467_v37 = vunpack.c.h.bf16 %v3493_v21 }
 0x313   : > { %v2730_v34 = vadd.f32 %v3356_v17, %v2729_v60  ;;  %v3571_v49 = vpop.f32.mrb[10].mxu1 }
 0x314   : > { %v2741_v3 = vadd.f32 %v3571_v49, %v3356_v17  ;;  %v2732_v31 = vpop.f32.mrb[11].mxu1  ;;  %v2794_v18 = vmax.f32 %v2738_v59, 0.0 }
 0x315   : > { %v2733_v62 = vadd.f32 %v3356_v17, %v2732_v31  ;;  %v2792_v15 = vmax.f32 %v2730_v34, 0.0  ;;  %v3463_v34 = vunpack.c.h.bf16 %v3492_v52 }
 0x316   : > { %v2795_v33 = vmax.f32 %v2741_v3, 0.0 }
 0x317   : > { %v2793_v4 = vmax.f32 %v2733_v62, 0.0 }
 0x318   : > { %v2809_v46 = vpack.c.bf16 %v2795_v33, %v2794_v18 }
 0x319   : > { %v2808_v58 = vpack.c.bf16 %v2793_v4, %v2792_v15 }
 0x31b   : > { %3586 = vmatprep.mubr.msk.bf16.mxu0 %vm1118_vm4, %v2808_v58 }
 0x31c   : > { %3587 = vmatmul.mubr.msk.bf16.vlgmr.msra.gmra.mrb[12].mxu0 %vm1118_vm4, %v2809_v46 }
 0x334   : > { %v3574_v35 = vpop.f32.mrb[12].mxu1 }
 0x335   : > { %v2754_v29 = vadd.f32 %v3574_v35, %v3356_v17  ;;  %v2745_v45 = vpop.f32.mrb[13].mxu1 }
 0x336   : > { %v2746_v5 = vadd.f32 %v3356_v17, %v2745_v45  ;;  %v3575_v8 = vpop.f32.mrb[14].mxu1 }
 0x337   : > { %v2757_v27 = vadd.f32 %v3575_v8, %v3356_v17  ;;  %v2748_v11 = vpop.f32.mrb[15].mxu1  ;;  %v2798_v12 = vmax.f32 %v2754_v29, 0.0 }
 0x338   : > { %v2749_v7 = vadd.f32 %v3356_v17, %v2748_v11  ;;  %v2796_v30 = vmax.f32 %v2746_v5, 0.0  ;;  %v3494_v11 = vld [vmem:[%s4124_s29 + $0x18] sm:$0xff]  }
 0x339   : > { %v2799_v16 = vmax.f32 %v2757_v27, 0.0  ;;  %v3495_v27 = vld [vmem:[%s4124_s29 + $0x20] sm:$0xff]  }
 0x33a   : > { %v2797_v36 = vmax.f32 %v2749_v7, 0.0  ;;  %v3474_v7 = vunpack.c.l.bf16 %v3495_v27 }
 0x33b   : > { %v2811_v38 = vpack.c.bf16 %v2799_v16, %v2798_v12  ;;  %v3470_v16 = vunpack.c.l.bf16 %v3494_v11 }
 0x33c   : > { %v2810_v9 = vpack.c.bf16 %v2797_v36, %v2796_v30 }
 0x33e   : > { %3590 = vmatprep.mubr.msk.bf16.mxu0 %vm1118_vm4, %v2810_v9 }
 0x33f   : > { %3591 = vmatmul.mubr.msk.bf16.gmra.mrb[16].mxu0 %vm1118_vm4, %v2811_v38  ;;  %v3475_v38 = vunpack.c.h.bf16 %v3495_v27 }
 0x341   : > { %v3578_v10 = vpop.f32.mrb[16].mxu1 }
 0x342   : > { %v2770_v14 = vadd.f32 %v3578_v10, %v3356_v17  ;;  %v2761_v22 = vpop.f32.mrb[17].mxu1 }
 0x343   : > { %v2762_v57 = vadd.f32 %v3356_v17, %v2761_v22  ;;  %v3579_v54 = vpop.f32.mrb[18].mxu1 }
 0x344   : > { %v2773_v0 = vadd.f32 %v3579_v54, %v3356_v17  ;;  %v2764_v26 = vpop.f32.mrb[19].mxu1  ;;  %v2802_v19 = vmax.f32 %v2770_v14, 0.0  ;;  %v3471_v14 = vunpack.c.h.bf16 %v3494_v11 }
 0x345   : > { %v2765_v32 = vadd.f32 %v3356_v17, %v2764_v26  ;;  %v2800_v24 = vmax.f32 %v2762_v57, 0.0 }
 0x346   : > { %v2803_v28 = vmax.f32 %v2773_v0, 0.0 }
 0x347   : > { %v2801_v42 = vmax.f32 %v2765_v32, 0.0 }
 0x348   : > { %v2813_v25 = vpack.c.bf16 %v2803_v28, %v2802_v19 }
 0x349   : > { %v2812_v43 = vpack.c.bf16 %v2801_v42, %v2800_v24 }
 0x34b   : > { %3594 = vmatprep.mubr.msk.bf16.mxu0 %vm1118_vm4, %v2812_v43 }
 0x34c   : > { %3595 = vmatmul.mubr.msk.bf16.gmra.mrb[20].mxu0 %vm1118_vm4, %v2813_v25 }
 0x34d   : > { %v3582_v63 = vpop.f32.mrb[20].mxu1 }
 0x34e   : > { %v2786_v55 = vadd.f32 %v3582_v63, %v3356_v17  ;;  %v2777_v1 = vpop.f32.mrb[21].mxu1 }
 0x34f   : > { %v2778_v39 = vadd.f32 %v3356_v17, %v2777_v1  ;;  %v3583_v44 = vpop.f32.mrb[22].mxu1 }
 0x350   : > { %v2789_v61 = vadd.f32 %v3583_v44, %v3356_v17  ;;  %v2780_v20 = vpop.f32.mrb[23].mxu1  ;;  %v2806_v47 = vmax.f32 %v2786_v55, 0.0  ;;  %v3497_v55 = vld [vmem:[%s4124_s29 + $0x30] sm:$0xff]  }
 0x351   : > { %v2781_v23 = vadd.f32 %v3356_v17, %v2780_v20  ;;  %v2804_v48 = vmax.f32 %v2778_v39, 0.0  ;;  %v3496_v39 = vld [vmem:[%s4124_s29 + $0x28] sm:$0xff]  }
 0x352   : > { %v2807_v2 = vmax.f32 %v2789_v61, 0.0  ;;  %v3482_v61 = vunpack.c.l.bf16 %v3497_v55 }
 0x353   : > { %v2805_v50 = vmax.f32 %v2781_v23, 0.0  ;;  %v3478_v23 = vunpack.c.l.bf16 %v3496_v39 }
 0x354   : > { %v2815_v51 = vpack.c.bf16 %v2807_v2, %v2806_v47 }
 0x355   : > { %v2814_v6 = vpack.c.bf16 %v2805_v50, %v2804_v48  ;;  %v3483_v48 = vunpack.c.h.bf16 %v3497_v55 }
 0x357   : > { %3598 = vmatprep.mubr.msk.bf16.mxu0 %vm1118_vm4, %v2814_v6  ;;  %v3479_v6 = vunpack.c.h.bf16 %v3496_v39 }
 0x358   : > { %3599 = vmatmul.mubr.msk.bf16.gmra.mrb[24].mxu0 %vm1118_vm4, %v2815_v51 }
 0x3ef   : > { %v3588_v56 = vpop.f32.mrb[12].mxu0 }
 0x3f0   : > { %v2930_v13 = vadd.f32 %v3588_v56, %v4972_v40  ;;  %v2921_v17 = vpop.f32.mrb[13].mxu0 }
 0x3f1   : > { %v2922_v59 = vadd.f32 %v4972_v40, %v2921_v17  ;;  %v3589_v60 = vpop.f32.mrb[14].mxu0 }
 0x3f2   : > { %v2986_v49 = vadd.f32 %v3466_v53, %v2930_v13  ;;  %v2933_v3 = vadd.f32 %v3589_v60, %v4972_v40  ;;  %v2924_v31 = vpop.f32.mrb[15].mxu0 }
 0x3f3   : > { %v2984_v62 = vadd.f32 %v3462_v41, %v2922_v59  ;;  %v2925_v18 = vadd.f32 %v4972_v40, %v2924_v31 }
 0x3f4   : > { %v3002_v33 = vmax.f32 %v2986_v49, 0.0  ;;  %v2987_v15 = vadd.f32 %v3467_v37, %v2933_v3 }
 0x3f5   : > { %v3000_v4 = vmax.f32 %v2984_v62, 0.0  ;;  %v2985_v46 = vadd.f32 %v3463_v34, %v2925_v18  ;;  %v3499_v62 = vld [vmem:[%s4124_s29 + $0x40] sm:$0xff]  }
 0x3f6   : > { %v3445_v58 = vpack.c.bf16 %v3002_v33, %v3002_v33  ;;  %v3003_v35 = vmax.f32 %v2987_v15, 0.0  ;;  %v3498_v33 = vld [vmem:[%s4124_s29 + $0x38] sm:$0xff]   ;;  %v3490_v15 = vunpack.c.l.bf16 %v3499_v62  ;;  %s3111_s29 = sadd.s32 %s3459_s12, %s3416_s13  ;;  %s3801_s12 = scalar_lea.vmem %s3800_s15, 2048 }
 0x3f7   : > { %v3443_v29 = vpack.c.bf16 %v3000_v4, %v3000_v4  ;;  %v3001_v45 = vmax.f32 %v2985_v46, 0.0  ;;  %v3486_v46 = vunpack.c.l.bf16 %v3498_v33  ;;  %s3417_s8 = sshll.u32 %s3111_s29, 6  ;;  %p3803_p1 = scmp.lt.s32.totalorder %s3801_s12, %s3795_s22 }
 0x3f8   : > { %3083 = vst.msk [vmem:[%s4981_s10 + $0x8] sm:$0xf] %vm3080_vm15, %v3445_v58  ;;  %v3446_v5 = vpack.c.bf16 %v3003_v35, %v3003_v35  ;;  %s5037_s21 = scalar_lea.hbm %s5115_s7, %s3417_s8 }
 0x3f9   : > { %3081 = vst.msk [vmem:[%s4981_s10] sm:$0xf] %vm3080_vm15, %v3443_v29  ;;  %v3444_v8 = vpack.c.bf16 %v3001_v45, %v3001_v45  ;;  %v3491_v29 = vunpack.c.h.bf16 %v3499_v62  ;;  %p3804_p3 = por %p3803_p1, %p3802_p0 }
 0x3fa   : > { %3084 = vst.msk [vmem:[%s4981_s10 + $0xc] sm:$0xf] %vm3080_vm15, %v3446_v5 }
 0x3fb   : > { %3082 = vst.msk [vmem:[%s4981_s10 + $0x4] sm:$0xf] %vm3080_vm15, %v3444_v8  ;;  %v3487_v8 = vunpack.c.h.bf16 %v3498_v33  ;;  %p3805_p8 = pnand %p3804_p3, %p3798_p4 }
 0x412   : > { %v3592_v12 = vpop.f32.mrb[16].mxu0 }
 0x413   : > { %v2946_v30 = vadd.f32 %v3592_v12, %v4972_v40  ;;  %v2937_v36 = vpop.f32.mrb[17].mxu0 }
 0x414   : > { %v2938_v9 = vadd.f32 %v4972_v40, %v2937_v36  ;;  %v3593_v10 = vpop.f32.mrb[18].mxu0 }
 0x415   : > { %v2990_v22 = vadd.f32 %v3474_v7, %v2946_v30  ;;  %v2949_v57 = vadd.f32 %v3593_v10, %v4972_v40  ;;  %v2940_v54 = vpop.f32.mrb[19].mxu0 }
 0x416   : > { %v2988_v0 = vadd.f32 %v3470_v16, %v2938_v9  ;;  %v2941_v26 = vadd.f32 %v4972_v40, %v2940_v54 }
 0x417   : > { %v3006_v32 = vmax.f32 %v2990_v22, 0.0  ;;  %v2991_v19 = vadd.f32 %v3475_v38, %v2949_v57 }
 0x418   : > { %v3004_v28 = vmax.f32 %v2988_v0, 0.0  ;;  %v2989_v24 = vadd.f32 %v3471_v14, %v2941_v26 }
 0x419   : > { %v3449_v42 = vpack.c.bf16 %v3006_v32, %v3006_v32  ;;  %v3007_v25 = vmax.f32 %v2991_v19, 0.0 }
 0x41a   : > { %v3447_v43 = vpack.c.bf16 %v3004_v28, %v3004_v28  ;;  %v3005_v63 = vmax.f32 %v2989_v24, 0.0 }
 0x41b   : > { %3087 = vst.msk [vmem:[%s4981_s10 + $0x18] sm:$0xf] %vm3080_vm15, %v3449_v42  ;;  %v3450_v1 = vpack.c.bf16 %v3007_v25, %v3007_v25 }
 0x41c   : > { %3085 = vst.msk [vmem:[%s4981_s10 + $0x10] sm:$0xf] %vm3080_vm15, %v3447_v43  ;;  %v3448_v44 = vpack.c.bf16 %v3005_v63, %v3005_v63 }
 0x41d   : > { %3088 = vst.msk [vmem:[%s4981_s10 + $0x1c] sm:$0xf] %vm3080_vm15, %v3450_v1 }
 0x41e   : > { %3086 = vst.msk [vmem:[%s4981_s10 + $0x14] sm:$0xf] %vm3080_vm15, %v3448_v44 }
 0x41f   : > { %v3596_v20 = vpop.f32.mrb[20].mxu0 }
 0x420   : > { %v2962_v47 = vadd.f32 %v3596_v20, %v4972_v40  ;;  %v2953_v2 = vpop.f32.mrb[21].mxu0 }
 0x421   : > { %v2954_v50 = vadd.f32 %v4972_v40, %v2953_v2  ;;  %v3597_v51 = vpop.f32.mrb[22].mxu0 }
 0x422   : > { %v2994_v21 = vadd.f32 %v3482_v61, %v2962_v47  ;;  %v2965_v52 = vadd.f32 %v3597_v51, %v4972_v40  ;;  %v2956_v53 = vpop.f32.mrb[23].mxu0 }
 0x423   : > { %v2992_v56 = vadd.f32 %v3478_v23, %v2954_v50  ;;  %v2957_v41 = vadd.f32 %v4972_v40, %v2956_v53 }
 0x424   : > { %v3010_v13 = vmax.f32 %v2994_v21, 0.0  ;;  %v2995_v17 = vadd.f32 %v3483_v48, %v2965_v52 }
 0x425   : > { %v3008_v37 = vmax.f32 %v2992_v56, 0.0  ;;  %v2993_v59 = vadd.f32 %v3479_v6, %v2957_v41 }
 0x426   : > { %v3453_v60 = vpack.c.bf16 %v3010_v13, %v3010_v13  ;;  %v3011_v34 = vmax.f32 %v2995_v17, 0.0 }
 0x427   : > { %v3451_v49 = vpack.c.bf16 %v3008_v37, %v3008_v37  ;;  %v3009_v3 = vmax.f32 %v2993_v59, 0.0 }
 0x428   : > { %3091 = vst.msk [vmem:[%s4981_s10 + $0x28] sm:$0xf] %vm3080_vm15, %v3453_v60  ;;  %v3454_v31 = vpack.c.bf16 %v3011_v34, %v3011_v34 }
 0x429   : > { %3089 = vst.msk [vmem:[%s4981_s10 + $0x20] sm:$0xf] %vm3080_vm15, %v3451_v49  ;;  %v3452_v18 = vpack.c.bf16 %v3009_v3, %v3009_v3 }
 0x42a   : > { %3092 = vst.msk [vmem:[%s4981_s10 + $0x2c] sm:$0xf] %vm3080_vm15, %v3454_v31 }
 0x42b   : > { %3090 = vst.msk [vmem:[%s4981_s10 + $0x24] sm:$0xf] %vm3080_vm15, %v3452_v18  ;;  %v3600_v4 = vpop.f32.mrb[24].mxu0 }
 0x42c   : > { %v2978_v58 = vadd.f32 %v3600_v4, %v4972_v40  ;;  %v2969_v35 = vpop.f32.mrb[25].mxu0 }
 0x42d   : > { %v2970_v45 = vadd.f32 %v4972_v40, %v2969_v35  ;;  %v3601_v5 = vpop.f32.mrb[26].mxu0 }
 0x42e   : > { %v2998_v27 = vadd.f32 %v3490_v15, %v2978_v58  ;;  %v2981_v11 = vadd.f32 %v3601_v5, %v4972_v40  ;;  %v2972_v7 = vpop.f32.mrb[27].mxu0 }
 0x42f   : > { %v2996_v12 = vadd.f32 %v3486_v46, %v2970_v45  ;;  %v2973_v16 = vadd.f32 %v4972_v40, %v2972_v7 }
 0x430   : > { %v3014_v30 = vmax.f32 %v2998_v27, 0.0  ;;  %v2999_v36 = vadd.f32 %v3491_v29, %v2981_v11 }
 0x431   : > { %v3012_v38 = vmax.f32 %v2996_v12, 0.0  ;;  %v2997_v9 = vadd.f32 %v3487_v8, %v2973_v16 }
 0x432   : > { %v3457_v10 = vpack.c.bf16 %v3014_v30, %v3014_v30  ;;  %v3015_v14 = vmax.f32 %v2999_v36, 0.0 }
 0x433   : > { %v3455_v22 = vpack.c.bf16 %v3012_v38, %v3012_v38  ;;  %v3013_v57 = vmax.f32 %v2997_v9, 0.0 }
 0x434   : > { %3095 = vst.msk [vmem:[%s4981_s10 + $0x38] sm:$0xf] %vm3080_vm15, %v3457_v10  ;;  %v3458_v54 = vpack.c.bf16 %v3015_v14, %v3015_v14 }
 0x435   : > { %3093 = vst.msk [vmem:[%s4981_s10 + $0x30] sm:$0xf] %vm3080_vm15, %v3455_v22  ;;  %v3456_v40 = vpack.c.bf16 %v3013_v57, %v3013_v57 }
 0x436   : > { %3096 = vst.msk [vmem:[%s4981_s10 + $0x3c] sm:$0xf] %vm3080_vm15, %v3458_v54 }
 0x437   : > { %3094 = vst.msk [vmem:[%s4981_s10 + $0x34] sm:$0xf] %vm3080_vm15, %v3456_v40 }
 0x438   : > { %3808 = shalt.err (!%p3805_p8)
}
 0x439   : > { %s3809_s20 = scalar_lea.hbm %s5037_s21, 1024  ;;  %s3813_s29 = scalar_lea.hbm %s5115_s7, 4096 }
 0x43a   : > { %p3810_p10 = scmp.ne.s32.totalorder %s5037_s21, %s3809_s20  ;;  %p3814_p5 = scmp.lt.u32.totalorder %s5037_s21, %s5115_s7 }
 0x43b   : > { %p3815_p6 = scmp.lt.u32.totalorder %s3813_s29, %s3809_s20  ;;  %p3817_p7 = scmp.lt.u32.totalorder %s3809_s20, %s5037_s21 }
 0x43c   : > { %p3811_p11 = pnand %p3810_p10, %p5166_p12 }
 0x43d   : > { %p3816_p9 = por %p3815_p6, %p3814_p5 }
 0x43e   : > { %p3812_p13 = pneg %p3811_p11 }
 0x43f   : > { %p3818_p2 = por %p3817_p7, %p3816_p9 }
 0x441   : > { %p3819_p4 = pnand %p3818_p2, %p3812_p13 }
 0x443   : > { %3822 = shalt.err (!%p3819_p4)
}
 0x444   : > { %s3931_s27 = smov 4  }
 0x445   : > { %3613 = dma.vmem_to_hbm [thread:$0]  (%p5166_p12), %s5030_s30, 1024, %s5037_s21, %s5045_s19, %s3926_s18, %s3926_s18, %s3931_s27  }
 0x446 PF: > { %p3624_p0 = scmp.ge.s32.totalorder %s3917_s11, 2  ;;  %s3129_s22 = sand.u32 1, %s3877_s24  }
 0x447   : > { %p5167_p1 = scmp.ne.s32.totalorder %s5131_s9, 0  ;;  %s3130_s17 = scalar_lea.sflag [#allocation6], %s3129_s22 }
 0x449   : > { %p3620_p3 = pnand %p3624_p0, %p5167_p1 }
 0x44b   : > { %3872 = dma.done.wait (!%p3620_p3), %s3130_s17, 1024  }
 0x44c   : > { %3874 = vsyncadd (!%p3620_p3), %s3130_s17, 4294966272  ;;  %s23_s11 = sadd.s32 1, %s3917_s11   ;;  %s5168_s23 = sld [smem:[#allocation10_spill]] }
 0x44d   : > { %p20_p8 = scmp.ge.s32.totalorder %s23_s11, 6   ;;  %s5169_s29 = sld [smem:[#allocation15_spill]] }
 0x44e   : > { %s5170_s30 = sld [smem:[#allocation11_spill]]  ;;  %s5171_s8 = sld [smem:[#allocation12_spill]] }
 0x44f   : > { %s5172_s9 = sld [smem:[#allocation13_spill]]  ;;  %s5173_s10 = sld [smem:[#allocation14_spill]] }
 0x450   : > { %s5174_s24 = smov %s3881_s25  ;;  %s5175_s25 = smov %s3885_s26 }
 0x451   : > { %s5176_s26 = smov %s4062_s14  ;;  %s5177_s27 = smov %s3893_s28 }
 0x452   : > { %s5178_s28 = smov %s5168_s23  ;;  %22 = sbr.rel (!%p20_p8) target bundleno = 9 (0x9), region = 97 }
 0x459   :  { %3135 = vsyncpa [#allocation5], 1 }
 0x45a   :  { %3137 = vsyncpa [#allocation5 + $0x1], 1 }
 0x45b   :  { %3138 = vsyncpa [#allocation6], 1 }
 0x45c   :  { %3140 = vsyncpa [#allocation6 + $0x1], 1 }

</bundles_post_ra>
